<compile_context>
chip_gen: v6e
topology: v6e:2x2x1
jax: 0.10.0
libtpu: 0.0.40
codegen_flags: <defaults>
</compile_context>

<pallas_src>
import functools
import math

import numpy as np
import jax
import jax.numpy as jnp
from jax.experimental import pallas as pl
from jax.experimental.pallas import tpu as pltpu

MATMUL_DTYPE = jnp.bfloat16     # MXU operand dtype (accumulation stays f32)
LN_EPS = 1e-5                   # PyTorch LayerNorm default


# ------------------------------ helpers ------------------------------------ #

def _pick_block(dim, candidates):
    """Largest candidate tile that evenly divides `dim`, else the full dim."""
    for c in candidates:
        if dim >= c and dim % c == 0:
            return c
    return dim


# ----------------------------- Pallas kernels ------------------------------ #

def _linear_kernel(x_ref, w_ref, b_ref, o_ref, acc_ref, *, relu, compute_dtype):
    k = pl.program_id(2)

    @pl.when(k == 0)
    def _():
        acc_ref[...] = jnp.zeros_like(acc_ref)

    acc_ref[...] += jnp.dot(
        x_ref[...].astype(compute_dtype), w_ref[...],
        preferred_element_type=jnp.float32)

    @pl.when(k == pl.num_programs(2) - 1)
    def _():
        acc = acc_ref[...] + b_ref[...]
        if relu:
            acc = jnp.maximum(acc, 0.0)
        o_ref[...] = acc.astype(o_ref.dtype)


def linear(x, w, b, relu=False):
    """x: (..., K) @ w: (K, N) + b: (N,) -> (..., N); tiled M/N/K Pallas matmul."""
    orig = x.shape
    M = int(np.prod(orig[:-1]))
    K = orig[-1]
    N = w.shape[1]
    bm = _pick_block(M, (256, 128))
    bn = _pick_block(N, (512, 256, 128))
    bk = _pick_block(K, (512, 256, 128))
    grid = (M // bm, N // bn, K // bk)

    out = pl.pallas_call(
        functools.partial(_linear_kernel, relu=relu, compute_dtype=w.dtype),
        grid=grid,
        out_shape=jax.ShapeDtypeStruct((M, N), jnp.float32),
        in_specs=[
            pl.BlockSpec((bm, bk), lambda i, j, k: (i, k)),
            pl.BlockSpec((bk, bn), lambda i, j, k: (k, j)),
            pl.BlockSpec((1, bn), lambda i, j, k: (0, j)),
        ],
        out_specs=pl.BlockSpec((bm, bn), lambda i, j, k: (i, j)),
        scratch_shapes=[pltpu.VMEM((bm, bn), jnp.float32)],
        compiler_params=pltpu.CompilerParams(
            dimension_semantics=("parallel", "parallel", "arbitrary")),
    )(x.reshape(M, K), w, b.reshape(1, N))
    return out.reshape(orig[:-1] + (N,))


def _linear_res_ln_kernel(x_ref, w_ref, b_ref, r_ref, g_ref, bb_ref,
                          o_ref, acc_ref, *, compute_dtype, eps):
    """out = LayerNorm(residual + (x @ w + b)) -- LN over the full last dim."""
    k = pl.program_id(2)

    @pl.when(k == 0)
    def _():
        acc_ref[...] = jnp.zeros_like(acc_ref)

    acc_ref[...] += jnp.dot(
        x_ref[...].astype(compute_dtype), w_ref[...],
        preferred_element_type=jnp.float32)

    @pl.when(k == pl.num_programs(2) - 1)
    def _():
        h = acc_ref[...] + b_ref[...] + r_ref[...]
        mean = jnp.mean(h, axis=-1, keepdims=True)
        c = h - mean
        var = jnp.mean(c * c, axis=-1, keepdims=True)
        inv = jax.lax.rsqrt(var + eps)
        o_ref[...] = (c * inv * g_ref[...] + bb_ref[...]).astype(o_ref.dtype)


def linear_residual_layernorm(x, w, b, residual, gamma, beta, eps=LN_EPS):
    """Fused: LayerNorm(residual + x @ w + b). Requires full N per tile."""
    orig = residual.shape
    M = int(np.prod(orig[:-1]))
    K = x.shape[-1]
    N = w.shape[1]
    bm = _pick_block(M, (256, 128))
    bk = _pick_block(K, (512, 256, 128))
    grid = (M // bm, 1, K // bk)

    out = pl.pallas_call(
        functools.partial(_linear_res_ln_kernel, compute_dtype=w.dtype, eps=eps),
        grid=grid,
        out_shape=jax.ShapeDtypeStruct((M, N), jnp.float32),
        in_specs=[
            pl.BlockSpec((bm, bk), lambda i, j, k: (i, k)),
            pl.BlockSpec((bk, N), lambda i, j, k: (k, 0)),
            pl.BlockSpec((1, N), lambda i, j, k: (0, 0)),
            pl.BlockSpec((bm, N), lambda i, j, k: (i, 0)),
            pl.BlockSpec((1, N), lambda i, j, k: (0, 0)),
            pl.BlockSpec((1, N), lambda i, j, k: (0, 0)),
        ],
        out_specs=pl.BlockSpec((bm, N), lambda i, j, k: (i, 0)),
        scratch_shapes=[pltpu.VMEM((bm, N), jnp.float32)],
        compiler_params=pltpu.CompilerParams(
            dimension_semantics=("parallel", "parallel", "arbitrary")),
    )(x.reshape(M, K), w, b.reshape(1, N), residual.reshape(M, N),
      gamma.reshape(1, N), beta.reshape(1, N))
    return out.reshape(orig)


def _attention_kernel(q_ref, k_ref, v_ref, o_ref, *, scale):
    """All H heads of one batch per grid step; batched dot_general (no k.T)."""
    q = q_ref[0].astype(MATMUL_DTYPE)     # (H, Sq, Dh)
    k = k_ref[0].astype(MATMUL_DTYPE)     # (H, Sk, Dh)
    v = v_ref[0].astype(MATMUL_DTYPE)     # (H, Sk, Dh)

    s = jax.lax.dot_general(
        q, k, (((2,), (2,)), ((0,), (0,))),
        preferred_element_type=jnp.float32) * scale            # (H, Sq, Sk) f32
    m = jnp.max(s, axis=-1, keepdims=True)
    p = jnp.exp(s - m)
    p = p * pl.reciprocal(jnp.sum(p, axis=-1, keepdims=True), approx=True)
    o = jax.lax.dot_general(
        p.astype(MATMUL_DTYPE), v, (((2,), (1,)), ((0,), (0,))),
        preferred_element_type=jnp.float32)                    # (H, Sq, Dh) f32
    o_ref[0] = o.astype(o_ref.dtype)


def attention(q, k, v):
    """Scaled-dot-product attention; q/k/v: (B, H, S, Dh); one grid step per batch."""
    B, H, Sq, Dh = q.shape
    Sk = k.shape[2]
    scale = 1.0 / math.sqrt(Dh)
    return pl.pallas_call(
        functools.partial(_attention_kernel, scale=scale),
        grid=(B,),
        out_shape=jax.ShapeDtypeStruct((B, H, Sq, Dh), jnp.float32),
        in_specs=[
            pl.BlockSpec((1, H, Sq, Dh), lambda b: (b, 0, 0, 0)),
            pl.BlockSpec((1, H, Sk, Dh), lambda b: (b, 0, 0, 0)),
            pl.BlockSpec((1, H, Sk, Dh), lambda b: (b, 0, 0, 0)),
        ],
        out_specs=pl.BlockSpec((1, H, Sq, Dh), lambda b: (b, 0, 0, 0)),
        compiler_params=pltpu.CompilerParams(dimension_semantics=("parallel",)),
    )(q, k, v)


# ------------------------------ model pieces ------------------------------- #

def split_heads(t, num_heads):
    B, S, E = t.shape
    Dh = E // num_heads
    return t.reshape(B, S, num_heads, Dh).transpose(0, 2, 1, 3)   # (B, H, S, Dh)


def merge_heads(t):
    B, H, S, Dh = t.shape
    return t.transpose(0, 2, 1, 3).reshape(B, S, H * Dh)          # (B, S, E)


def transformer_decoder_layer(x, memory, p, num_heads):
    """Post-norm nn.TransformerDecoderLayer (relu FFN); dropout = identity."""
    # ---- self attention (packed QKV projection, fused out-proj + res + LN1) ----
    qkv = linear(x, p["sa_w_qkv"], p["sa_b_qkv"])
    q, k, v = jnp.split(qkv, 3, axis=-1)
    o = merge_heads(attention(split_heads(q, num_heads),
                              split_heads(k, num_heads),
                              split_heads(v, num_heads)))
    x = linear_residual_layernorm(o, p["sa_w_o"], p["sa_b_o"],
                                  x, p["ln1_g"], p["ln1_b"])

    # ---- cross attention (packed KV projection of memory, fused res + LN2) ----
    q = linear(x, p["ca_w_q"], p["ca_b_q"])
    kv = linear(memory, p["ca_w_kv"], p["ca_b_kv"])
    k, v = jnp.split(kv, 2, axis=-1)
    o = merge_heads(attention(split_heads(q, num_heads),
                              split_heads(k, num_heads),
                              split_heads(v, num_heads)))
    x = linear_residual_layernorm(o, p["ca_w_o"], p["ca_b_o"],
                                  x, p["ln2_g"], p["ln2_b"])

    # ---- FFN (relu), second matmul fused with residual + LN3 ----
    h = linear(x, p["w1"], p["b1"], relu=True)
    x = linear_residual_layernorm(h, p["w2"], p["b2"],
                                  x, p["ln3_g"], p["ln3_b"])
    return x


def make_positional_encoding(d_model, max_len=5000):
    pe = np.zeros((max_len, d_model), dtype=np.float32)
    position = np.arange(0, max_len, dtype=np.float32)[:, None]
    div_term = np.exp(
        np.arange(0, d_model, 2).astype(np.float32) * (-np.log(10000.0) / d_model))
    pe[:, 0::2] = np.sin(position * div_term)
    pe[:, 1::2] = np.cos(position * div_term)
    return jnp.asarray(pe)


def decoder_forward(params, memory, tgt, word_embeddings, *, num_heads, num_classes):
    """Equivalent of Decoder.forward(memory, tgt, word_embeddings)."""
    # Fused memory prep:
    #   concat([memory, word_embedding_proj(we)]) @ cp_w + cp_b
    # == concat([memory, we]) @ [cp_w_top ; wep_w @ cp_w_bot] + fused_bias
    mem_in = jnp.concatenate([memory, word_embeddings], axis=-1)
    mem = linear(mem_in, params["w_mem"], params["b_mem"])

    # TransformerDecoder: embedding + positional encoding (+ dropout = identity)
    tgt_embed = jnp.take(params["emb_table"], tgt, axis=0)        # (B, S_tgt, H)
    S_tgt = tgt.shape[1]
    x = tgt_embed + params["pe"][None, :S_tgt, :]

    for lp in params["layers"]:
        x = transformer_decoder_layer(x, mem, lp, num_heads)

    # fc_out: lane-dense padded projection, slice the real classes outside.
    logits = linear(x, params["fc_w_pad"], params["fc_b_pad"])
    return logits[..., :num_classes]


# ------------------------------ param init --------------------------------- #

def _init_linear(key, fan_in, fan_out, scale=0.05):
    kw, kb = jax.random.split(key)
    w = scale * jax.random.normal(kw, (fan_in, fan_out), jnp.float32)
    b = scale * jax.random.normal(kb, (fan_out,), jnp.float32)
    return w, b


def _cast_w(w):
    return w.astype(MATMUL_DTYPE)


def init_params(key, hidden_dim, num_layers, num_classes, num_heads,
                embedding_dim, dim_ff):
    del num_heads  # static; NOT stored in the params pytree (that caused the crash)
    keys = jax.random.split(key, 5 + num_layers)

    # word_embedding_proj / concat_proj -> algebraically fused memory-prep weight
    wep_w, wep_b = _init_linear(keys[0], embedding_dim, hidden_dim)
    cp_w, cp_b = _init_linear(keys[1], 2 * hidden_dim, hidden_dim)
    w_mem = jnp.concatenate([cp_w[:hidden_dim], wep_w @ cp_w[hidden_dim:]], axis=0)
    b_mem = wep_b @ cp_w[hidden_dim:] + cp_b

    emb_table = 0.05 * jax.random.normal(keys[2], (num_classes, hidden_dim), jnp.float32)
    emb_table = emb_table.at[0].set(0.0)          # padding_idx = 0

    fc_w, fc_b = _init_linear(keys[3], hidden_dim, num_classes)
    n_pad = ((num_classes + 127) // 128) * 128    # lane-dense output width
    fc_w_pad = jnp.zeros((hidden_dim, n_pad), jnp.float32).at[:, :num_classes].set(fc_w)
    fc_b_pad = jnp.zeros((n_pad,), jnp.float32).at[:num_classes].set(fc_b)

    layers = []
    for li in range(num_layers):
        lk = jax.random.split(keys[5 + li], 10)
        # self-attention (packed QKV)
        wq, bq = _init_linear(lk[0], hidden_dim, hidden_dim)
        wk, bk = _init_linear(lk[1], hidden_dim, hidden_dim)
        wv, bv = _init_linear(lk[2], hidden_dim, hidden_dim)
        wo, bo = _init_linear(lk[3], hidden_dim, hidden_dim)
        sa_w_qkv = jnp.concatenate([wq, wk, wv], axis=1)
        sa_b_qkv = jnp.concatenate([bq, bk, bv])
        # cross-attention (Q separate, packed KV over memory)
        cwq, cbq = _init_linear(lk[4], hidden_dim, hidden_dim)
        cwk, cbk = _init_linear(lk[5], hidden_dim, hidden_dim)
        cwv, cbv = _init_linear(lk[6], hidden_dim, hidden_dim)
        cwo, cbo = _init_linear(lk[7], hidden_dim, hidden_dim)
        ca_w_kv = jnp.concatenate([cwk, cwv], axis=1)
        ca_b_kv = jnp.concatenate([cbk, cbv])
        # FFN
        w1, b1 = _init_linear(lk[8], hidden_dim, dim_ff)
        w2, b2 = _init_linear(lk[9], dim_ff, hidden_dim)

        layers.append(dict(
            sa_w_qkv=_cast_w(sa_w_qkv), sa_b_qkv=sa_b_qkv,
            sa_w_o=_cast_w(wo), sa_b_o=bo,
            ca_w_q=_cast_w(cwq), ca_b_q=cbq,
            ca_w_kv=_cast_w(ca_w_kv), ca_b_kv=ca_b_kv,
            ca_w_o=_cast_w(cwo), ca_b_o=cbo,
            w1=_cast_w(w1), b1=b1, w2=_cast_w(w2), b2=b2,
            ln1_g=jnp.ones((hidden_dim,), jnp.float32),
            ln1_b=jnp.zeros((hidden_dim,), jnp.float32),
            ln2_g=jnp.ones((hidden_dim,), jnp.float32),
            ln2_b=jnp.zeros((hidden_dim,), jnp.float32),
            ln3_g=jnp.ones((hidden_dim,), jnp.float32),
            ln3_b=jnp.zeros((hidden_dim,), jnp.float32),
        ))

    return dict(
        w_mem=_cast_w(w_mem), b_mem=b_mem,
        emb_table=emb_table, pe=make_positional_encoding(hidden_dim, 5000),
        layers=layers,
        fc_w_pad=_cast_w(fc_w_pad), fc_b_pad=fc_b_pad,
    )


# --------------------------------- main ------------------------------------ #

if __name__ == "__main__":
    # Small shapes consistent with the module's forward signature.
    B, S_MEM, S_TGT = 2, 8, 8
    HIDDEN_DIM = 32
    NUM_HEADS = 8            # head_dim = 4
    NUM_LAYERS = 2
    NUM_CLASSES = 12
    EMBEDDING_DIM = 48
    DIM_FF = 2048            # PyTorch nn.TransformerDecoderLayer default

    key = jax.random.PRNGKey(0)
    k_par, k_mem, k_we, k_tgt = jax.random.split(key, 4)

    params = init_params(k_par, HIDDEN_DIM, NUM_LAYERS, NUM_CLASSES,
                         NUM_HEADS, EMBEDDING_DIM, DIM_FF)

    memory = jax.random.normal(k_mem, (B, S_MEM, HIDDEN_DIM), jnp.float32)
    word_embeddings = jax.random.normal(k_we, (B, S_MEM, EMBEDDING_DIM), jnp.float32)
    tgt = jax.random.randint(k_tgt, (B, S_TGT), 0, NUM_CLASSES, dtype=jnp.int32)

    fwd = jax.jit(functools.partial(decoder_forward,
                                    num_heads=NUM_HEADS, num_classes=NUM_CLASSES))
    out = fwd(params, memory, tgt, word_embeddings)
    out = jax.block_until_ready(out)

    assert out.shape == (B, S_TGT, NUM_CLASSES), out.shape
    assert jnp.all(jnp.isfinite(out))
    print("KERNEL_OK")
</pallas_src>

<mosaic_0001>
module attributes {stable_mosaic.version = 11 : i64} {
  func.func @_attention_kernel(%arg0: i32, %arg1: memref<1x8x8x4xf32, #tpu.memory_space<vmem>>, %arg2: memref<1x8x8x4xf32, #tpu.memory_space<vmem>>, %arg3: memref<1x8x8x4xf32, #tpu.memory_space<vmem>>, %arg4: memref<1x8x8x4xf32, #tpu.memory_space<vmem>>) attributes {dimension_semantics = [#tpu.dimension_semantics<parallel>], iteration_bounds = array<i64: 2>, scalar_prefetch = 0 : i64, scratch_operands = 0 : i64, tpu.core_type = #tpu.core_type<tc>, window_params = [{transform_indices = @transform_0, window_bounds = array<i64: 1, 8, 8, 4>}, {transform_indices = @transform_1, window_bounds = array<i64: 1, 8, 8, 4>}, {transform_indices = @transform_2, window_bounds = array<i64: 1, 8, 8, 4>}, {transform_indices = @transform_3, window_bounds = array<i64: 1, 8, 8, 4>}]} {
    %c0 = arith.constant 0 : index
    %c0_0 = arith.constant 0 : index
    %c0_1 = arith.constant 0 : index
    %c0_2 = arith.constant 0 : index
    %0 = vector.load %arg1[%c0, %c0_0, %c0_1, %c0_2] : memref<1x8x8x4xf32, #tpu.memory_space<vmem>>, vector<1x8x8x4xf32>
    %1 = vector.shape_cast %0 : vector<1x8x8x4xf32> to vector<8x8x4xf32>
    %2 = arith.truncf %1 : vector<8x8x4xf32> to vector<8x8x4xbf16>
    %c0_3 = arith.constant 0 : index
    %c0_4 = arith.constant 0 : index
    %c0_5 = arith.constant 0 : index
    %c0_6 = arith.constant 0 : index
    %3 = vector.load %arg2[%c0_3, %c0_4, %c0_5, %c0_6] : memref<1x8x8x4xf32, #tpu.memory_space<vmem>>, vector<1x8x8x4xf32>
    %4 = vector.shape_cast %3 : vector<1x8x8x4xf32> to vector<8x8x4xf32>
    %5 = arith.truncf %4 : vector<8x8x4xf32> to vector<8x8x4xbf16>
    %c0_7 = arith.constant 0 : index
    %c0_8 = arith.constant 0 : index
    %c0_9 = arith.constant 0 : index
    %c0_10 = arith.constant 0 : index
    %6 = vector.load %arg3[%c0_7, %c0_8, %c0_9, %c0_10] : memref<1x8x8x4xf32, #tpu.memory_space<vmem>>, vector<1x8x8x4xf32>
    %7 = vector.shape_cast %6 : vector<1x8x8x4xf32> to vector<8x8x4xf32>
    %8 = arith.truncf %7 : vector<8x8x4xf32> to vector<8x8x4xbf16>
    %cst = arith.constant dense<0.000000e+00> : vector<8x8x8xf32>
    %9 = tpu.matmul %2, %5, %cst {dimension_numbers = #tpu.dot_dimension_numbers<[2], [2], [1], [1], [0, 0, 0, 1, 1, 1], [0], [0]>} : vector<8x8x4xbf16>, vector<8x8x4xbf16>, vector<8x8x8xf32> -> vector<8x8x8xf32>
    %cst_11 = arith.constant 5.000000e-01 : f32
    %10 = vector.broadcast %cst_11 : f32 to vector<8x8x8xf32>
    %11 = arith.mulf %9, %10 : vector<8x8x8xf32>
    %cst_12 = arith.constant dense<0xFF800000> : vector<8x8xf32>
    %12 = vector.multi_reduction <maximumf>, %11, %cst_12 [2] : vector<8x8x8xf32> to vector<8x8xf32>
    %13 = vector.shape_cast %12 : vector<8x8xf32> to vector<8x8x1xf32>
    %14 = vector.broadcast %13 : vector<8x8x1xf32> to vector<8x8x8xf32>
    %15 = arith.subf %11, %14 : vector<8x8x8xf32>
    %16 = math.exp %15 : vector<8x8x8xf32>
    %cst_13 = arith.constant dense<0.000000e+00> : vector<8x8xf32>
    %17 = vector.multi_reduction <add>, %16, %cst_13 [2] : vector<8x8x8xf32> to vector<8x8xf32>
    %18 = vector.shape_cast %17 : vector<8x8xf32> to vector<8x8x1xf32>
    %19 = tpu.reciprocal %18 {approx = true} : vector<8x8x1xf32> -> vector<8x8x1xf32>
    %20 = vector.broadcast %19 : vector<8x8x1xf32> to vector<8x8x8xf32>
    %21 = arith.mulf %16, %20 : vector<8x8x8xf32>
    %22 = arith.truncf %21 : vector<8x8x8xf32> to vector<8x8x8xbf16>
    %cst_14 = arith.constant dense<0.000000e+00> : vector<8x8x4xf32>
    %23 = tpu.matmul %22, %8, %cst_14 {dimension_numbers = #tpu.dot_dimension_numbers<[2], [1], [1], [2], [0, 0, 0, 1, 1, 2], [0], [0]>} : vector<8x8x8xbf16>, vector<8x8x4xbf16>, vector<8x8x4xf32> -> vector<8x8x4xf32>
    %c0_15 = arith.constant 0 : index
    %c0_16 = arith.constant 0 : index
    %c0_17 = arith.constant 0 : index
    %c0_18 = arith.constant 0 : index
    %24 = vector.load %arg4[%c0_15, %c0_16, %c0_17, %c0_18] : memref<1x8x8x4xf32, #tpu.memory_space<vmem>>, vector<1x8x8x4xf32>
    %25 = vector.shape_cast %24 : vector<1x8x8x4xf32> to vector<8x8x4xf32>
    %26 = vector.shape_cast %23 : vector<8x8x4xf32> to vector<1x8x8x4xf32>
    tpu.vector_store %arg4[%c0_15, %c0_16, %c0_17, %c0_18], %26 {strides = array<i32>} : memref<1x8x8x4xf32, #tpu.memory_space<vmem>>, vector<1x8x8x4xf32>,
    return
  }
  func.func @transform_0(%arg0: i32) -> (i32, i32, i32, i32) {
    %c0_i32 = arith.constant 0 : i32
    %c0_i32_0 = arith.constant 0 : i32
    %c0_i32_1 = arith.constant 0 : i32
    %c0_i32_2 = arith.constant 0 : i32
    return %arg0, %c0_i32, %c0_i32_0, %c0_i32_1 : i32, i32, i32, i32
  }
  func.func @transform_1(%arg0: i32) -> (i32, i32, i32, i32) {
    %c0_i32 = arith.constant 0 : i32
    %c0_i32_0 = arith.constant 0 : i32
    %c0_i32_1 = arith.constant 0 : i32
    %c0_i32_2 = arith.constant 0 : i32
    return %arg0, %c0_i32, %c0_i32_0, %c0_i32_1 : i32, i32, i32, i32
  }
  func.func @transform_2(%arg0: i32) -> (i32, i32, i32, i32) {
    %c0_i32 = arith.constant 0 : i32
    %c0_i32_0 = arith.constant 0 : i32
    %c0_i32_1 = arith.constant 0 : i32
    %c0_i32_2 = arith.constant 0 : i32
    return %arg0, %c0_i32, %c0_i32_0, %c0_i32_1 : i32, i32, i32, i32
  }
  func.func @transform_3(%arg0: i32) -> (i32, i32, i32, i32) {
    %c0_i32 = arith.constant 0 : i32
    %c0_i32_0 = arith.constant 0 : i32
    %c0_i32_1 = arith.constant 0 : i32
    %c0_i32_2 = arith.constant 0 : i32
    return %arg0, %c0_i32, %c0_i32_0, %c0_i32_1 : i32, i32, i32, i32
  }
}

module attributes {stable_mosaic.version = 11 : i64} {
  func.func @_linear_kernel(%arg0: i32, %arg1: i32, %arg2: i32, %arg3: memref<16x32xf32, #tpu.memory_space<vmem>>, %arg4: memref<32x96xbf16, #tpu.memory_space<vmem>>, %arg5: memref<1x96xf32, #tpu.memory_space<vmem>>, %arg6: memref<16x96xf32, #tpu.memory_space<vmem>>, %arg7: memref<16x96xf32, #tpu.memory_space<vmem>>) attributes {dimension_semantics = [#tpu.dimension_semantics<parallel>, #tpu.dimension_semantics<parallel>, #tpu.dimension_semantics<arbitrary>], iteration_bounds = array<i64: 1, 1, 1>, scalar_prefetch = 0 : i64, scratch_operands = 1 : i64, tpu.core_type = #tpu.core_type<tc>, window_params = [{transform_indices = @transform_0, window_bounds = array<i64: 16, 32>}, {transform_indices = @transform_1, window_bounds = array<i64: 32, 96>}, {transform_indices = @transform_2, window_bounds = array<i64: 1, 96>}, {transform_indices = @transform_3, window_bounds = array<i64: 16, 96>}]} {
    %c0_i32 = arith.constant 0 : i32
    %0 = arith.cmpi eq, %arg2, %c0_i32 : i32
    %1 = arith.extui %0 : i1 to i32
    %c0_i32_0 = arith.constant 0 : i32
    %2 = arith.cmpi ne, %1, %c0_i32_0 : i32
    scf.if %2 {
      %cst_10 = arith.constant 0.000000e+00 : f32
      %13 = vector.broadcast %cst_10 : f32 to vector<16x96xf32>
      %c0_11 = arith.constant 0 : index
      %c0_12 = arith.constant 0 : index
      %14 = vector.load %arg7[%c0_11, %c0_12] : memref<16x96xf32, #tpu.memory_space<vmem>>, vector<16x96xf32>
      tpu.vector_store %arg7[%c0_11, %c0_12], %13 {strides = array<i32>} : memref<16x96xf32, #tpu.memory_space<vmem>>, vector<16x96xf32>,
    } else {
    }
    %c0 = arith.constant 0 : index
    %c0_1 = arith.constant 0 : index
    %3 = vector.load %arg7[%c0, %c0_1] : memref<16x96xf32, #tpu.memory_space<vmem>>, vector<16x96xf32>
    %c0_2 = arith.constant 0 : index
    %c0_3 = arith.constant 0 : index
    %4 = vector.load %arg3[%c0_2, %c0_3] : memref<16x32xf32, #tpu.memory_space<vmem>>, vector<16x32xf32>
    %5 = arith.truncf %4 : vector<16x32xf32> to vector<16x32xbf16>
    %c0_4 = arith.constant 0 : index
    %c0_5 = arith.constant 0 : index
    %6 = vector.load %arg4[%c0_4, %c0_5] : memref<32x96xbf16, #tpu.memory_space<vmem>>, vector<32x96xbf16>
    %cst = arith.constant dense<0.000000e+00> : vector<16x96xf32>
    %7 = tpu.matmul %5, %6, %cst {dimension_numbers = #tpu.dot_dimension_numbers<[1], [0], [0], [1], [0, 0, 1, 1], [], []>} : vector<16x32xbf16>, vector<32x96xbf16>, vector<16x96xf32> -> vector<16x96xf32>
    %8 = arith.addf %3, %7 : vector<16x96xf32>
    %c0_6 = arith.constant 0 : index
    %c0_7 = arith.constant 0 : index
    %9 = vector.load %arg7[%c0_6, %c0_7] : memref<16x96xf32, #tpu.memory_space<vmem>>, vector<16x96xf32>
    tpu.vector_store %arg7[%c0_6, %c0_7], %8 {strides = array<i32>} : memref<16x96xf32, #tpu.memory_space<vmem>>, vector<16x96xf32>,
    %c0_i32_8 = arith.constant 0 : i32
    %10 = arith.cmpi eq, %arg2, %c0_i32_8 : i32
    %11 = arith.extui %10 : i1 to i32
    %c0_i32_9 = arith.constant 0 : i32
    %12 = arith.cmpi ne, %11, %c0_i32_9 : i32
    scf.if %12 {
      %c0_10 = arith.constant 0 : index
      %c0_11 = arith.constant 0 : index
      %13 = vector.load %arg7[%c0_10, %c0_11] : memref<16x96xf32, #tpu.memory_space<vmem>>, vector<16x96xf32>
      %c0_12 = arith.constant 0 : index
      %c0_13 = arith.constant 0 : index
      %14 = vector.load %arg5[%c0_12, %c0_13] : memref<1x96xf32, #tpu.memory_space<vmem>>, vector<1x96xf32>
      %15 = vector.broadcast %14 : vector<1x96xf32> to vector<16x96xf32>
      %16 = arith.addf %13, %15 : vector<16x96xf32>
      %c0_14 = arith.constant 0 : index
      %c0_15 = arith.constant 0 : index
      %17 = vector.load %arg6[%c0_14, %c0_15] : memref<16x96xf32, #tpu.memory_space<vmem>>, vector<16x96xf32>
      tpu.vector_store %arg6[%c0_14, %c0_15], %16 {strides = array<i32>} : memref<16x96xf32, #tpu.memory_space<vmem>>, vector<16x96xf32>,
    } else {
    }
    return
  }
  func.func @transform_0(%arg0: i32, %arg1: i32, %arg2: i32) -> (i32, i32) {
    %c0_i32 = arith.constant 0 : i32
    return %arg0, %arg2 : i32, i32
  }
  func.func @transform_1(%arg0: i32, %arg1: i32, %arg2: i32) -> (i32, i32) {
    %c0_i32 = arith.constant 0 : i32
    return %arg2, %arg1 : i32, i32
  }
  func.func @transform_2(%arg0: i32, %arg1: i32, %arg2: i32) -> (i32, i32) {
    %c0_i32 = arith.constant 0 : i32
    %c0_i32_0 = arith.constant 0 : i32
    return %c0_i32, %arg1 : i32, i32
  }
  func.func @transform_3(%arg0: i32, %arg1: i32, %arg2: i32) -> (i32, i32) {
    %c0_i32 = arith.constant 0 : i32
    return %arg0, %arg1 : i32, i32
  }
}

module attributes {stable_mosaic.version = 11 : i64} {
  func.func @_linear_kernel(%arg0: i32, %arg1: i32, %arg2: i32, %arg3: memref<16x32xf32, #tpu.memory_space<vmem>>, %arg4: memref<32x32xbf16, #tpu.memory_space<vmem>>, %arg5: memref<1x32xf32, #tpu.memory_space<vmem>>, %arg6: memref<16x32xf32, #tpu.memory_space<vmem>>, %arg7: memref<16x32xf32, #tpu.memory_space<vmem>>) attributes {dimension_semantics = [#tpu.dimension_semantics<parallel>, #tpu.dimension_semantics<parallel>, #tpu.dimension_semantics<arbitrary>], iteration_bounds = array<i64: 1, 1, 1>, scalar_prefetch = 0 : i64, scratch_operands = 1 : i64, tpu.core_type = #tpu.core_type<tc>, window_params = [{transform_indices = @transform_0, window_bounds = array<i64: 16, 32>}, {transform_indices = @transform_1, window_bounds = array<i64: 32, 32>}, {transform_indices = @transform_2, window_bounds = array<i64: 1, 32>}, {transform_indices = @transform_3, window_bounds = array<i64: 16, 32>}]} {
    %c0_i32 = arith.constant 0 : i32
    %0 = arith.cmpi eq, %arg2, %c0_i32 : i32
    %1 = arith.extui %0 : i1 to i32
    %c0_i32_0 = arith.constant 0 : i32
    %2 = arith.cmpi ne, %1, %c0_i32_0 : i32
    scf.if %2 {
      %cst_10 = arith.constant 0.000000e+00 : f32
      %13 = vector.broadcast %cst_10 : f32 to vector<16x32xf32>
      %c0_11 = arith.constant 0 : index
      %c0_12 = arith.constant 0 : index
      %14 = vector.load %arg7[%c0_11, %c0_12] : memref<16x32xf32, #tpu.memory_space<vmem>>, vector<16x32xf32>
      tpu.vector_store %arg7[%c0_11, %c0_12], %13 {strides = array<i32>} : memref<16x32xf32, #tpu.memory_space<vmem>>, vector<16x32xf32>,
    } else {
    }
    %c0 = arith.constant 0 : index
    %c0_1 = arith.constant 0 : index
    %3 = vector.load %arg7[%c0, %c0_1] : memref<16x32xf32, #tpu.memory_space<vmem>>, vector<16x32xf32>
    %c0_2 = arith.constant 0 : index
    %c0_3 = arith.constant 0 : index
    %4 = vector.load %arg3[%c0_2, %c0_3] : memref<16x32xf32, #tpu.memory_space<vmem>>, vector<16x32xf32>
    %5 = arith.truncf %4 : vector<16x32xf32> to vector<16x32xbf16>
    %c0_4 = arith.constant 0 : index
    %c0_5 = arith.constant 0 : index
    %6 = vector.load %arg4[%c0_4, %c0_5] : memref<32x32xbf16, #tpu.memory_space<vmem>>, vector<32x32xbf16>
    %cst = arith.constant dense<0.000000e+00> : vector<16x32xf32>
    %7 = tpu.matmul %5, %6, %cst {dimension_numbers = #tpu.dot_dimension_numbers<[1], [0], [0], [1], [0, 0, 1, 1], [], []>} : vector<16x32xbf16>, vector<32x32xbf16>, vector<16x32xf32> -> vector<16x32xf32>
    %8 = arith.addf %3, %7 : vector<16x32xf32>
    %c0_6 = arith.constant 0 : index
    %c0_7 = arith.constant 0 : index
    %9 = vector.load %arg7[%c0_6, %c0_7] : memref<16x32xf32, #tpu.memory_space<vmem>>, vector<16x32xf32>
    tpu.vector_store %arg7[%c0_6, %c0_7], %8 {strides = array<i32>} : memref<16x32xf32, #tpu.memory_space<vmem>>, vector<16x32xf32>,
    %c0_i32_8 = arith.constant 0 : i32
    %10 = arith.cmpi eq, %arg2, %c0_i32_8 : i32
    %11 = arith.extui %10 : i1 to i32
    %c0_i32_9 = arith.constant 0 : i32
    %12 = arith.cmpi ne, %11, %c0_i32_9 : i32
    scf.if %12 {
      %c0_10 = arith.constant 0 : index
      %c0_11 = arith.constant 0 : index
      %13 = vector.load %arg7[%c0_10, %c0_11] : memref<16x32xf32, #tpu.memory_space<vmem>>, vector<16x32xf32>
      %c0_12 = arith.constant 0 : index
      %c0_13 = arith.constant 0 : index
      %14 = vector.load %arg5[%c0_12, %c0_13] : memref<1x32xf32, #tpu.memory_space<vmem>>, vector<1x32xf32>
      %15 = vector.broadcast %14 : vector<1x32xf32> to vector<16x32xf32>
      %16 = arith.addf %13, %15 : vector<16x32xf32>
      %c0_14 = arith.constant 0 : index
      %c0_15 = arith.constant 0 : index
      %17 = vector.load %arg6[%c0_14, %c0_15] : memref<16x32xf32, #tpu.memory_space<vmem>>, vector<16x32xf32>
      tpu.vector_store %arg6[%c0_14, %c0_15], %16 {strides = array<i32>} : memref<16x32xf32, #tpu.memory_space<vmem>>, vector<16x32xf32>,
    } else {
    }
    return
  }
  func.func @transform_0(%arg0: i32, %arg1: i32, %arg2: i32) -> (i32, i32) {
    %c0_i32 = arith.constant 0 : i32
    return %arg0, %arg2 : i32, i32
  }
  func.func @transform_1(%arg0: i32, %arg1: i32, %arg2: i32) -> (i32, i32) {
    %c0_i32 = arith.constant 0 : i32
    return %arg2, %arg1 : i32, i32
  }
  func.func @transform_2(%arg0: i32, %arg1: i32, %arg2: i32) -> (i32, i32) {
    %c0_i32 = arith.constant 0 : i32
    %c0_i32_0 = arith.constant 0 : i32
    return %c0_i32, %arg1 : i32, i32
  }
  func.func @transform_3(%arg0: i32, %arg1: i32, %arg2: i32) -> (i32, i32) {
    %c0_i32 = arith.constant 0 : i32
    return %arg0, %arg1 : i32, i32
  }
}

module attributes {stable_mosaic.version = 11 : i64} {
  func.func @_linear_res_ln_kernel(%arg0: i32, %arg1: i32, %arg2: i32, %arg3: memref<16x32xf32, #tpu.memory_space<vmem>>, %arg4: memref<32x32xbf16, #tpu.memory_space<vmem>>, %arg5: memref<1x32xf32, #tpu.memory_space<vmem>>, %arg6: memref<16x32xf32, #tpu.memory_space<vmem>>, %arg7: memref<1x32xf32, #tpu.memory_space<vmem>>, %arg8: memref<1x32xf32, #tpu.memory_space<vmem>>, %arg9: memref<16x32xf32, #tpu.memory_space<vmem>>, %arg10: memref<16x32xf32, #tpu.memory_space<vmem>>) attributes {dimension_semantics = [#tpu.dimension_semantics<parallel>, #tpu.dimension_semantics<parallel>, #tpu.dimension_semantics<arbitrary>], iteration_bounds = array<i64: 1, 1, 1>, scalar_prefetch = 0 : i64, scratch_operands = 1 : i64, tpu.core_type = #tpu.core_type<tc>, window_params = [{transform_indices = @transform_0, window_bounds = array<i64: 16, 32>}, {transform_indices = @transform_1, window_bounds = array<i64: 32, 32>}, {pipeline_mode = #tpu.pipeline_mode<synchronous>, transform_indices = @transform_2, window_bounds = array<i64: 1, 32>}, {transform_indices = @transform_3, window_bounds = array<i64: 16, 32>}, {pipeline_mode = #tpu.pipeline_mode<synchronous>, transform_indices = @transform_4, window_bounds = array<i64: 1, 32>}, {pipeline_mode = #tpu.pipeline_mode<synchronous>, transform_indices = @transform_5, window_bounds = array<i64: 1, 32>}, {transform_indices = @transform_6, window_bounds = array<i64: 16, 32>}]} {
    %c0_i32 = arith.constant 0 : i32
    %0 = arith.cmpi eq, %arg2, %c0_i32 : i32
    %1 = arith.extui %0 : i1 to i32
    %c0_i32_0 = arith.constant 0 : i32
    %2 = arith.cmpi ne, %1, %c0_i32_0 : i32
    scf.if %2 {
      %cst_10 = arith.constant 0.000000e+00 : f32
      %13 = vector.broadcast %cst_10 : f32 to vector<16x32xf32>
      %c0_11 = arith.constant 0 : index
      %c0_12 = arith.constant 0 : index
      %14 = vector.load %arg10[%c0_11, %c0_12] : memref<16x32xf32, #tpu.memory_space<vmem>>, vector<16x32xf32>
      tpu.vector_store %arg10[%c0_11, %c0_12], %13 {strides = array<i32>} : memref<16x32xf32, #tpu.memory_space<vmem>>, vector<16x32xf32>,
    } else {
    }
    %c0 = arith.constant 0 : index
    %c0_1 = arith.constant 0 : index
    %3 = vector.load %arg10[%c0, %c0_1] : memref<16x32xf32, #tpu.memory_space<vmem>>, vector<16x32xf32>
    %c0_2 = arith.constant 0 : index
    %c0_3 = arith.constant 0 : index
    %4 = vector.load %arg3[%c0_2, %c0_3] : memref<16x32xf32, #tpu.memory_space<vmem>>, vector<16x32xf32>
    %5 = arith.truncf %4 : vector<16x32xf32> to vector<16x32xbf16>
    %c0_4 = arith.constant 0 : index
    %c0_5 = arith.constant 0 : index
    %6 = vector.load %arg4[%c0_4, %c0_5] : memref<32x32xbf16, #tpu.memory_space<vmem>>, vector<32x32xbf16>
    %cst = arith.constant dense<0.000000e+00> : vector<16x32xf32>
    %7 = tpu.matmul %5, %6, %cst {dimension_numbers = #tpu.dot_dimension_numbers<[1], [0], [0], [1], [0, 0, 1, 1], [], []>} : vector<16x32xbf16>, vector<32x32xbf16>, vector<16x32xf32> -> vector<16x32xf32>
    %8 = arith.addf %3, %7 : vector<16x32xf32>
    %c0_6 = arith.constant 0 : index
    %c0_7 = arith.constant 0 : index
    %9 = vector.load %arg10[%c0_6, %c0_7] : memref<16x32xf32, #tpu.memory_space<vmem>>, vector<16x32xf32>
    tpu.vector_store %arg10[%c0_6, %c0_7], %8 {strides = array<i32>} : memref<16x32xf32, #tpu.memory_space<vmem>>, vector<16x32xf32>,
    %c0_i32_8 = arith.constant 0 : i32
    %10 = arith.cmpi eq, %arg2, %c0_i32_8 : i32
    %11 = arith.extui %10 : i1 to i32
    %c0_i32_9 = arith.constant 0 : i32
    %12 = arith.cmpi ne, %11, %c0_i32_9 : i32
    scf.if %12 {
      %c0_10 = arith.constant 0 : index
      %c0_11 = arith.constant 0 : index
      %13 = vector.load %arg10[%c0_10, %c0_11] : memref<16x32xf32, #tpu.memory_space<vmem>>, vector<16x32xf32>
      %c0_12 = arith.constant 0 : index
      %c0_13 = arith.constant 0 : index
      %14 = vector.load %arg5[%c0_12, %c0_13] : memref<1x32xf32, #tpu.memory_space<vmem>>, vector<1x32xf32>
      %15 = vector.broadcast %14 : vector<1x32xf32> to vector<16x32xf32>
      %16 = arith.addf %13, %15 : vector<16x32xf32>
      %c0_14 = arith.constant 0 : index
      %c0_15 = arith.constant 0 : index
      %17 = vector.load %arg6[%c0_14, %c0_15] : memref<16x32xf32, #tpu.memory_space<vmem>>, vector<16x32xf32>
      %18 = arith.addf %16, %17 : vector<16x32xf32>
      %cst_16 = arith.constant dense<0.000000e+00> : vector<16xf32>
      %19 = vector.multi_reduction <add>, %18, %cst_16 [1] : vector<16x32xf32> to vector<16xf32>
      %20 = vector.shape_cast %19 : vector<16xf32> to vector<16x1xf32>
      %cst_17 = arith.constant 3.200000e+01 : f32
      %21 = vector.broadcast %cst_17 : f32 to vector<16x1xf32>
      %22 = arith.divf %20, %21 : vector<16x1xf32>
      %23 = vector.broadcast %22 : vector<16x1xf32> to vector<16x32xf32>
      %24 = arith.subf %18, %23 : vector<16x32xf32>
      %25 = arith.mulf %24, %24 : vector<16x32xf32>
      %cst_18 = arith.constant dense<0.000000e+00> : vector<16xf32>
      %26 = vector.multi_reduction <add>, %25, %cst_18 [1] : vector<16x32xf32> to vector<16xf32>
      %27 = vector.shape_cast %26 : vector<16xf32> to vector<16x1xf32>
      %cst_19 = arith.constant 3.200000e+01 : f32
      %28 = vector.broadcast %cst_19 : f32 to vector<16x1xf32>
      %29 = arith.divf %27, %28 : vector<16x1xf32>
      %cst_20 = arith.constant 9.99999974E-6 : f32
      %30 = vector.broadcast %cst_20 : f32 to vector<16x1xf32>
      %31 = arith.addf %29, %30 : vector<16x1xf32>
      %32 = math.rsqrt %31 : vector<16x1xf32>
      %33 = vector.broadcast %32 : vector<16x1xf32> to vector<16x32xf32>
      %34 = arith.mulf %24, %33 : vector<16x32xf32>
      %c0_21 = arith.constant 0 : index
      %c0_22 = arith.constant 0 : index
      %35 = vector.load %arg7[%c0_21, %c0_22] : memref<1x32xf32, #tpu.memory_space<vmem>>, vector<1x32xf32>
      %36 = vector.broadcast %35 : vector<1x32xf32> to vector<16x32xf32>
      %37 = arith.mulf %34, %36 : vector<16x32xf32>
      %c0_23 = arith.constant 0 : index
      %c0_24 = arith.constant 0 : index
      %38 = vector.load %arg8[%c0_23, %c0_24] : memref<1x32xf32, #tpu.memory_space<vmem>>, vector<1x32xf32>
      %39 = vector.broadcast %38 : vector<1x32xf32> to vector<16x32xf32>
      %40 = arith.addf %37, %39 : vector<16x32xf32>
      %c0_25 = arith.constant 0 : index
      %c0_26 = arith.constant 0 : index
      %41 = vector.load %arg9[%c0_25, %c0_26] : memref<16x32xf32, #tpu.memory_space<vmem>>, vector<16x32xf32>
      tpu.vector_store %arg9[%c0_25, %c0_26], %40 {strides = array<i32>} : memref<16x32xf32, #tpu.memory_space<vmem>>, vector<16x32xf32>,
    } else {
    }
    return
  }
  func.func @transform_0(%arg0: i32, %arg1: i32, %arg2: i32) -> (i32, i32) {
    %c0_i32 = arith.constant 0 : i32
    return %arg0, %arg2 : i32, i32
  }
  func.func @transform_1(%arg0: i32, %arg1: i32, %arg2: i32) -> (i32, i32) {
    %c0_i32 = arith.constant 0 : i32
    %c0_i32_0 = arith.constant 0 : i32
    return %arg2, %c0_i32 : i32, i32
  }
  func.func @transform_2(%arg0: i32, %arg1: i32, %arg2: i32) -> (i32, i32) {
    %c0_i32 = arith.constant 0 : i32
    %c0_i32_0 = arith.constant 0 : i32
    %c0_i32_1 = arith.constant 0 : i32
    return %c0_i32, %c0_i32_0 : i32, i32
  }
  func.func @transform_3(%arg0: i32, %arg1: i32, %arg2: i32) -> (i32, i32) {
    %c0_i32 = arith.constant 0 : i32
    %c0_i32_0 = arith.constant 0 : i32
    return %arg0, %c0_i32 : i32, i32
  }
  func.func @transform_4(%arg0: i32, %arg1: i32, %arg2: i32) -> (i32, i32) {
    %c0_i32 = arith.constant 0 : i32
    %c0_i32_0 = arith.constant 0 : i32
    %c0_i32_1 = arith.constant 0 : i32
    return %c0_i32, %c0_i32_0 : i32, i32
  }
  func.func @transform_5(%arg0: i32, %arg1: i32, %arg2: i32) -> (i32, i32) {
    %c0_i32 = arith.constant 0 : i32
    %c0_i32_0 = arith.constant 0 : i32
    %c0_i32_1 = arith.constant 0 : i32
    return %c0_i32, %c0_i32_0 : i32, i32
  }
  func.func @transform_6(%arg0: i32, %arg1: i32, %arg2: i32) -> (i32, i32) {
    %c0_i32 = arith.constant 0 : i32
    %c0_i32_0 = arith.constant 0 : i32
    return %arg0, %c0_i32 : i32, i32
  }
}

module attributes {stable_mosaic.version = 11 : i64} {
  func.func @_linear_kernel(%arg0: i32, %arg1: i32, %arg2: i32, %arg3: memref<16x32xf32, #tpu.memory_space<vmem>>, %arg4: memref<32x64xbf16, #tpu.memory_space<vmem>>, %arg5: memref<1x64xf32, #tpu.memory_space<vmem>>, %arg6: memref<16x64xf32, #tpu.memory_space<vmem>>, %arg7: memref<16x64xf32, #tpu.memory_space<vmem>>) attributes {dimension_semantics = [#tpu.dimension_semantics<parallel>, #tpu.dimension_semantics<parallel>, #tpu.dimension_semantics<arbitrary>], iteration_bounds = array<i64: 1, 1, 1>, scalar_prefetch = 0 : i64, scratch_operands = 1 : i64, tpu.core_type = #tpu.core_type<tc>, window_params = [{transform_indices = @transform_0, window_bounds = array<i64: 16, 32>}, {transform_indices = @transform_1, window_bounds = array<i64: 32, 64>}, {transform_indices = @transform_2, window_bounds = array<i64: 1, 64>}, {transform_indices = @transform_3, window_bounds = array<i64: 16, 64>}]} {
    %c0_i32 = arith.constant 0 : i32
    %0 = arith.cmpi eq, %arg2, %c0_i32 : i32
    %1 = arith.extui %0 : i1 to i32
    %c0_i32_0 = arith.constant 0 : i32
    %2 = arith.cmpi ne, %1, %c0_i32_0 : i32
    scf.if %2 {
      %cst_10 = arith.constant 0.000000e+00 : f32
      %13 = vector.broadcast %cst_10 : f32 to vector<16x64xf32>
      %c0_11 = arith.constant 0 : index
      %c0_12 = arith.constant 0 : index
      %14 = vector.load %arg7[%c0_11, %c0_12] : memref<16x64xf32, #tpu.memory_space<vmem>>, vector<16x64xf32>
      tpu.vector_store %arg7[%c0_11, %c0_12], %13 {strides = array<i32>} : memref<16x64xf32, #tpu.memory_space<vmem>>, vector<16x64xf32>,
    } else {
    }
    %c0 = arith.constant 0 : index
    %c0_1 = arith.constant 0 : index
    %3 = vector.load %arg7[%c0, %c0_1] : memref<16x64xf32, #tpu.memory_space<vmem>>, vector<16x64xf32>
    %c0_2 = arith.constant 0 : index
    %c0_3 = arith.constant 0 : index
    %4 = vector.load %arg3[%c0_2, %c0_3] : memref<16x32xf32, #tpu.memory_space<vmem>>, vector<16x32xf32>
    %5 = arith.truncf %4 : vector<16x32xf32> to vector<16x32xbf16>
    %c0_4 = arith.constant 0 : index
    %c0_5 = arith.constant 0 : index
    %6 = vector.load %arg4[%c0_4, %c0_5] : memref<32x64xbf16, #tpu.memory_space<vmem>>, vector<32x64xbf16>
    %cst = arith.constant dense<0.000000e+00> : vector<16x64xf32>
    %7 = tpu.matmul %5, %6, %cst {dimension_numbers = #tpu.dot_dimension_numbers<[1], [0], [0], [1], [0, 0, 1, 1], [], []>} : vector<16x32xbf16>, vector<32x64xbf16>, vector<16x64xf32> -> vector<16x64xf32>
    %8 = arith.addf %3, %7 : vector<16x64xf32>
    %c0_6 = arith.constant 0 : index
    %c0_7 = arith.constant 0 : index
    %9 = vector.load %arg7[%c0_6, %c0_7] : memref<16x64xf32, #tpu.memory_space<vmem>>, vector<16x64xf32>
    tpu.vector_store %arg7[%c0_6, %c0_7], %8 {strides = array<i32>} : memref<16x64xf32, #tpu.memory_space<vmem>>, vector<16x64xf32>,
    %c0_i32_8 = arith.constant 0 : i32
    %10 = arith.cmpi eq, %arg2, %c0_i32_8 : i32
    %11 = arith.extui %10 : i1 to i32
    %c0_i32_9 = arith.constant 0 : i32
    %12 = arith.cmpi ne, %11, %c0_i32_9 : i32
    scf.if %12 {
      %c0_10 = arith.constant 0 : index
      %c0_11 = arith.constant 0 : index
      %13 = vector.load %arg7[%c0_10, %c0_11] : memref<16x64xf32, #tpu.memory_space<vmem>>, vector<16x64xf32>
      %c0_12 = arith.constant 0 : index
      %c0_13 = arith.constant 0 : index
      %14 = vector.load %arg5[%c0_12, %c0_13] : memref<1x64xf32, #tpu.memory_space<vmem>>, vector<1x64xf32>
      %15 = vector.broadcast %14 : vector<1x64xf32> to vector<16x64xf32>
      %16 = arith.addf %13, %15 : vector<16x64xf32>
      %c0_14 = arith.constant 0 : index
      %c0_15 = arith.constant 0 : index
      %17 = vector.load %arg6[%c0_14, %c0_15] : memref<16x64xf32, #tpu.memory_space<vmem>>, vector<16x64xf32>
      tpu.vector_store %arg6[%c0_14, %c0_15], %16 {strides = array<i32>} : memref<16x64xf32, #tpu.memory_space<vmem>>, vector<16x64xf32>,
    } else {
    }
    return
  }
  func.func @transform_0(%arg0: i32, %arg1: i32, %arg2: i32) -> (i32, i32) {
    %c0_i32 = arith.constant 0 : i32
    return %arg0, %arg2 : i32, i32
  }
  func.func @transform_1(%arg0: i32, %arg1: i32, %arg2: i32) -> (i32, i32) {
    %c0_i32 = arith.constant 0 : i32
    return %arg2, %arg1 : i32, i32
  }
  func.func @transform_2(%arg0: i32, %arg1: i32, %arg2: i32) -> (i32, i32) {
    %c0_i32 = arith.constant 0 : i32
    %c0_i32_0 = arith.constant 0 : i32
    return %c0_i32, %arg1 : i32, i32
  }
  func.func @transform_3(%arg0: i32, %arg1: i32, %arg2: i32) -> (i32, i32) {
    %c0_i32 = arith.constant 0 : i32
    return %arg0, %arg1 : i32, i32
  }
}

module attributes {stable_mosaic.version = 11 : i64} {
  func.func @_linear_kernel(%arg0: i32, %arg1: i32, %arg2: i32, %arg3: memref<16x80xf32, #tpu.memory_space<vmem>>, %arg4: memref<80x32xbf16, #tpu.memory_space<vmem>>, %arg5: memref<1x32xf32, #tpu.memory_space<vmem>>, %arg6: memref<16x32xf32, #tpu.memory_space<vmem>>, %arg7: memref<16x32xf32, #tpu.memory_space<vmem>>) attributes {dimension_semantics = [#tpu.dimension_semantics<parallel>, #tpu.dimension_semantics<parallel>, #tpu.dimension_semantics<arbitrary>], iteration_bounds = array<i64: 1, 1, 1>, scalar_prefetch = 0 : i64, scratch_operands = 1 : i64, tpu.core_type = #tpu.core_type<tc>, window_params = [{transform_indices = @transform_0, window_bounds = array<i64: 16, 80>}, {transform_indices = @transform_1, window_bounds = array<i64: 80, 32>}, {transform_indices = @transform_2, window_bounds = array<i64: 1, 32>}, {transform_indices = @transform_3, window_bounds = array<i64: 16, 32>}]} {
    %c0_i32 = arith.constant 0 : i32
    %0 = arith.cmpi eq, %arg2, %c0_i32 : i32
    %1 = arith.extui %0 : i1 to i32
    %c0_i32_0 = arith.constant 0 : i32
    %2 = arith.cmpi ne, %1, %c0_i32_0 : i32
    scf.if %2 {
      %cst_10 = arith.constant 0.000000e+00 : f32
      %13 = vector.broadcast %cst_10 : f32 to vector<16x32xf32>
      %c0_11 = arith.constant 0 : index
      %c0_12 = arith.constant 0 : index
      %14 = vector.load %arg7[%c0_11, %c0_12] : memref<16x32xf32, #tpu.memory_space<vmem>>, vector<16x32xf32>
      tpu.vector_store %arg7[%c0_11, %c0_12], %13 {strides = array<i32>} : memref<16x32xf32, #tpu.memory_space<vmem>>, vector<16x32xf32>,
    } else {
    }
    %c0 = arith.constant 0 : index
    %c0_1 = arith.constant 0 : index
    %3 = vector.load %arg7[%c0, %c0_1] : memref<16x32xf32, #tpu.memory_space<vmem>>, vector<16x32xf32>
    %c0_2 = arith.constant 0 : index
    %c0_3 = arith.constant 0 : index
    %4 = vector.load %arg3[%c0_2, %c0_3] : memref<16x80xf32, #tpu.memory_space<vmem>>, vector<16x80xf32>
    %5 = arith.truncf %4 : vector<16x80xf32> to vector<16x80xbf16>
    %c0_4 = arith.constant 0 : index
    %c0_5 = arith.constant 0 : index
    %6 = vector.load %arg4[%c0_4, %c0_5] : memref<80x32xbf16, #tpu.memory_space<vmem>>, vector<80x32xbf16>
    %cst = arith.constant dense<0.000000e+00> : vector<16x32xf32>
    %7 = tpu.matmul %5, %6, %cst {dimension_numbers = #tpu.dot_dimension_numbers<[1], [0], [0], [1], [0, 0, 1, 1], [], []>} : vector<16x80xbf16>, vector<80x32xbf16>, vector<16x32xf32> -> vector<16x32xf32>
    %8 = arith.addf %3, %7 : vector<16x32xf32>
    %c0_6 = arith.constant 0 : index
    %c0_7 = arith.constant 0 : index
    %9 = vector.load %arg7[%c0_6, %c0_7] : memref<16x32xf32, #tpu.memory_space<vmem>>, vector<16x32xf32>
    tpu.vector_store %arg7[%c0_6, %c0_7], %8 {strides = array<i32>} : memref<16x32xf32, #tpu.memory_space<vmem>>, vector<16x32xf32>,
    %c0_i32_8 = arith.constant 0 : i32
    %10 = arith.cmpi eq, %arg2, %c0_i32_8 : i32
    %11 = arith.extui %10 : i1 to i32
    %c0_i32_9 = arith.constant 0 : i32
    %12 = arith.cmpi ne, %11, %c0_i32_9 : i32
    scf.if %12 {
      %c0_10 = arith.constant 0 : index
      %c0_11 = arith.constant 0 : index
      %13 = vector.load %arg7[%c0_10, %c0_11] : memref<16x32xf32, #tpu.memory_space<vmem>>, vector<16x32xf32>
      %c0_12 = arith.constant 0 : index
      %c0_13 = arith.constant 0 : index
      %14 = vector.load %arg5[%c0_12, %c0_13] : memref<1x32xf32, #tpu.memory_space<vmem>>, vector<1x32xf32>
      %15 = vector.broadcast %14 : vector<1x32xf32> to vector<16x32xf32>
      %16 = arith.addf %13, %15 : vector<16x32xf32>
      %c0_14 = arith.constant 0 : index
      %c0_15 = arith.constant 0 : index
      %17 = vector.load %arg6[%c0_14, %c0_15] : memref<16x32xf32, #tpu.memory_space<vmem>>, vector<16x32xf32>
      tpu.vector_store %arg6[%c0_14, %c0_15], %16 {strides = array<i32>} : memref<16x32xf32, #tpu.memory_space<vmem>>, vector<16x32xf32>,
    } else {
    }
    return
  }
  func.func @transform_0(%arg0: i32, %arg1: i32, %arg2: i32) -> (i32, i32) {
    %c0_i32 = arith.constant 0 : i32
    return %arg0, %arg2 : i32, i32
  }
  func.func @transform_1(%arg0: i32, %arg1: i32, %arg2: i32) -> (i32, i32) {
    %c0_i32 = arith.constant 0 : i32
    return %arg2, %arg1 : i32, i32
  }
  func.func @transform_2(%arg0: i32, %arg1: i32, %arg2: i32) -> (i32, i32) {
    %c0_i32 = arith.constant 0 : i32
    %c0_i32_0 = arith.constant 0 : i32
    return %c0_i32, %arg1 : i32, i32
  }
  func.func @transform_3(%arg0: i32, %arg1: i32, %arg2: i32) -> (i32, i32) {
    %c0_i32 = arith.constant 0 : i32
    return %arg0, %arg1 : i32, i32
  }
}

module attributes {stable_mosaic.version = 11 : i64} {
  func.func @_linear_kernel(%arg0: i32, %arg1: i32, %arg2: i32, %arg3: memref<16x32xf32, #tpu.memory_space<vmem>>, %arg4: memref<32x512xbf16, #tpu.memory_space<vmem>>, %arg5: memref<1x512xf32, #tpu.memory_space<vmem>>, %arg6: memref<16x512xf32, #tpu.memory_space<vmem>>, %arg7: memref<16x512xf32, #tpu.memory_space<vmem>>) attributes {dimension_semantics = [#tpu.dimension_semantics<parallel>, #tpu.dimension_semantics<parallel>, #tpu.dimension_semantics<arbitrary>], iteration_bounds = array<i64: 1, 4, 1>, scalar_prefetch = 0 : i64, scratch_operands = 1 : i64, tpu.core_type = #tpu.core_type<tc>, window_params = [{transform_indices = @transform_0, window_bounds = array<i64: 16, 32>}, {transform_indices = @transform_1, window_bounds = array<i64: 32, 512>}, {transform_indices = @transform_2, window_bounds = array<i64: 1, 512>}, {transform_indices = @transform_3, window_bounds = array<i64: 16, 512>}]} {
    %c0_i32 = arith.constant 0 : i32
    %0 = arith.cmpi eq, %arg2, %c0_i32 : i32
    %1 = arith.extui %0 : i1 to i32
    %c0_i32_0 = arith.constant 0 : i32
    %2 = arith.cmpi ne, %1, %c0_i32_0 : i32
    scf.if %2 {
      %cst_10 = arith.constant 0.000000e+00 : f32
      %13 = vector.broadcast %cst_10 : f32 to vector<16x512xf32>
      %c0_11 = arith.constant 0 : index
      %c0_12 = arith.constant 0 : index
      %14 = vector.load %arg7[%c0_11, %c0_12] : memref<16x512xf32, #tpu.memory_space<vmem>>, vector<16x512xf32>
      tpu.vector_store %arg7[%c0_11, %c0_12], %13 {strides = array<i32>} : memref<16x512xf32, #tpu.memory_space<vmem>>, vector<16x512xf32>,
    } else {
    }
    %c0 = arith.constant 0 : index
    %c0_1 = arith.constant 0 : index
    %3 = vector.load %arg7[%c0, %c0_1] : memref<16x512xf32, #tpu.memory_space<vmem>>, vector<16x512xf32>
    %c0_2 = arith.constant 0 : index
    %c0_3 = arith.constant 0 : index
    %4 = vector.load %arg3[%c0_2, %c0_3] : memref<16x32xf32, #tpu.memory_space<vmem>>, vector<16x32xf32>
    %5 = arith.truncf %4 : vector<16x32xf32> to vector<16x32xbf16>
    %c0_4 = arith.constant 0 : index
    %c0_5 = arith.constant 0 : index
    %6 = vector.load %arg4[%c0_4, %c0_5] : memref<32x512xbf16, #tpu.memory_space<vmem>>, vector<32x512xbf16>
    %cst = arith.constant dense<0.000000e+00> : vector<16x512xf32>
    %7 = tpu.matmul %5, %6, %cst {dimension_numbers = #tpu.dot_dimension_numbers<[1], [0], [0], [1], [0, 0, 1, 1], [], []>} : vector<16x32xbf16>, vector<32x512xbf16>, vector<16x512xf32> -> vector<16x512xf32>
    %8 = arith.addf %3, %7 : vector<16x512xf32>
    %c0_6 = arith.constant 0 : index
    %c0_7 = arith.constant 0 : index
    %9 = vector.load %arg7[%c0_6, %c0_7] : memref<16x512xf32, #tpu.memory_space<vmem>>, vector<16x512xf32>
    tpu.vector_store %arg7[%c0_6, %c0_7], %8 {strides = array<i32>} : memref<16x512xf32, #tpu.memory_space<vmem>>, vector<16x512xf32>,
    %c0_i32_8 = arith.constant 0 : i32
    %10 = arith.cmpi eq, %arg2, %c0_i32_8 : i32
    %11 = arith.extui %10 : i1 to i32
    %c0_i32_9 = arith.constant 0 : i32
    %12 = arith.cmpi ne, %11, %c0_i32_9 : i32
    scf.if %12 {
      %c0_10 = arith.constant 0 : index
      %c0_11 = arith.constant 0 : index
      %13 = vector.load %arg7[%c0_10, %c0_11] : memref<16x512xf32, #tpu.memory_space<vmem>>, vector<16x512xf32>
      %c0_12 = arith.constant 0 : index
      %c0_13 = arith.constant 0 : index
      %14 = vector.load %arg5[%c0_12, %c0_13] : memref<1x512xf32, #tpu.memory_space<vmem>>, vector<1x512xf32>
      %15 = vector.broadcast %14 : vector<1x512xf32> to vector<16x512xf32>
      %16 = arith.addf %13, %15 : vector<16x512xf32>
      %cst_14 = arith.constant 0.000000e+00 : f32
      %17 = vector.broadcast %cst_14 : f32 to vector<16x512xf32>
      %18 = arith.maximumf %16, %17 : vector<16x512xf32>
      %c0_15 = arith.constant 0 : index
      %c0_16 = arith.constant 0 : index
      %19 = vector.load %arg6[%c0_15, %c0_16] : memref<16x512xf32, #tpu.memory_space<vmem>>, vector<16x512xf32>
      tpu.vector_store %arg6[%c0_15, %c0_16], %18 {strides = array<i32>} : memref<16x512xf32, #tpu.memory_space<vmem>>, vector<16x512xf32>,
    } else {
    }
    return
  }
  func.func @transform_0(%arg0: i32, %arg1: i32, %arg2: i32) -> (i32, i32) {
    %c0_i32 = arith.constant 0 : i32
    return %arg0, %arg2 : i32, i32
  }
  func.func @transform_1(%arg0: i32, %arg1: i32, %arg2: i32) -> (i32, i32) {
    %c0_i32 = arith.constant 0 : i32
    return %arg2, %arg1 : i32, i32
  }
  func.func @transform_2(%arg0: i32, %arg1: i32, %arg2: i32) -> (i32, i32) {
    %c0_i32 = arith.constant 0 : i32
    %c0_i32_0 = arith.constant 0 : i32
    return %c0_i32, %arg1 : i32, i32
  }
  func.func @transform_3(%arg0: i32, %arg1: i32, %arg2: i32) -> (i32, i32) {
    %c0_i32 = arith.constant 0 : i32
    return %arg0, %arg1 : i32, i32
  }
}

module attributes {stable_mosaic.version = 11 : i64} {
  func.func @_linear_res_ln_kernel(%arg0: i32, %arg1: i32, %arg2: i32, %arg3: memref<16x512xf32, #tpu.memory_space<vmem>>, %arg4: memref<512x32xbf16, #tpu.memory_space<vmem>>, %arg5: memref<1x32xf32, #tpu.memory_space<vmem>>, %arg6: memref<16x32xf32, #tpu.memory_space<vmem>>, %arg7: memref<1x32xf32, #tpu.memory_space<vmem>>, %arg8: memref<1x32xf32, #tpu.memory_space<vmem>>, %arg9: memref<16x32xf32, #tpu.memory_space<vmem>>, %arg10: memref<16x32xf32, #tpu.memory_space<vmem>>) attributes {dimension_semantics = [#tpu.dimension_semantics<parallel>, #tpu.dimension_semantics<parallel>, #tpu.dimension_semantics<arbitrary>], iteration_bounds = array<i64: 1, 1, 4>, scalar_prefetch = 0 : i64, scratch_operands = 1 : i64, tpu.core_type = #tpu.core_type<tc>, window_params = [{transform_indices = @transform_0, window_bounds = array<i64: 16, 512>}, {transform_indices = @transform_1, window_bounds = array<i64: 512, 32>}, {pipeline_mode = #tpu.pipeline_mode<synchronous>, transform_indices = @transform_2, window_bounds = array<i64: 1, 32>}, {transform_indices = @transform_3, window_bounds = array<i64: 16, 32>}, {pipeline_mode = #tpu.pipeline_mode<synchronous>, transform_indices = @transform_4, window_bounds = array<i64: 1, 32>}, {pipeline_mode = #tpu.pipeline_mode<synchronous>, transform_indices = @transform_5, window_bounds = array<i64: 1, 32>}, {transform_indices = @transform_6, window_bounds = array<i64: 16, 32>}]} {
    %c0_i32 = arith.constant 0 : i32
    %0 = arith.cmpi eq, %arg2, %c0_i32 : i32
    %1 = arith.extui %0 : i1 to i32
    %c0_i32_0 = arith.constant 0 : i32
    %2 = arith.cmpi ne, %1, %c0_i32_0 : i32
    scf.if %2 {
      %cst_9 = arith.constant 0.000000e+00 : f32
      %13 = vector.broadcast %cst_9 : f32 to vector<16x32xf32>
      %c0_10 = arith.constant 0 : index
      %c0_11 = arith.constant 0 : index
      %14 = vector.load %arg10[%c0_10, %c0_11] : memref<16x32xf32, #tpu.memory_space<vmem>>, vector<16x32xf32>
      tpu.vector_store %arg10[%c0_10, %c0_11], %13 {strides = array<i32>} : memref<16x32xf32, #tpu.memory_space<vmem>>, vector<16x32xf32>,
    } else {
    }
    %c0 = arith.constant 0 : index
    %c0_1 = arith.constant 0 : index
    %3 = vector.load %arg10[%c0, %c0_1] : memref<16x32xf32, #tpu.memory_space<vmem>>, vector<16x32xf32>
    %c0_2 = arith.constant 0 : index
    %c0_3 = arith.constant 0 : index
    %4 = vector.load %arg3[%c0_2, %c0_3] : memref<16x512xf32, #tpu.memory_space<vmem>>, vector<16x512xf32>
    %5 = arith.truncf %4 : vector<16x512xf32> to vector<16x512xbf16>
    %c0_4 = arith.constant 0 : index
    %c0_5 = arith.constant 0 : index
    %6 = vector.load %arg4[%c0_4, %c0_5] : memref<512x32xbf16, #tpu.memory_space<vmem>>, vector<512x32xbf16>
    %cst = arith.constant dense<0.000000e+00> : vector<16x32xf32>
    %7 = tpu.matmul %5, %6, %cst {dimension_numbers = #tpu.dot_dimension_numbers<[1], [0], [0], [1], [0, 0, 1, 1], [], []>} : vector<16x512xbf16>, vector<512x32xbf16>, vector<16x32xf32> -> vector<16x32xf32>
    %8 = arith.addf %3, %7 : vector<16x32xf32>
    %c0_6 = arith.constant 0 : index
    %c0_7 = arith.constant 0 : index
    %9 = vector.load %arg10[%c0_6, %c0_7] : memref<16x32xf32, #tpu.memory_space<vmem>>, vector<16x32xf32>
    tpu.vector_store %arg10[%c0_6, %c0_7], %8 {strides = array<i32>} : memref<16x32xf32, #tpu.memory_space<vmem>>, vector<16x32xf32>,
    %c3_i32 = arith.constant 3 : i32
    %10 = arith.cmpi eq, %arg2, %c3_i32 : i32
    %11 = arith.extui %10 : i1 to i32
    %c0_i32_8 = arith.constant 0 : i32
    %12 = arith.cmpi ne, %11, %c0_i32_8 : i32
    scf.if %12 {
      %c0_9 = arith.constant 0 : index
      %c0_10 = arith.constant 0 : index
      %13 = vector.load %arg10[%c0_9, %c0_10] : memref<16x32xf32, #tpu.memory_space<vmem>>, vector<16x32xf32>
      %c0_11 = arith.constant 0 : index
      %c0_12 = arith.constant 0 : index
      %14 = vector.load %arg5[%c0_11, %c0_12] : memref<1x32xf32, #tpu.memory_space<vmem>>, vector<1x32xf32>
      %15 = vector.broadcast %14 : vector<1x32xf32> to vector<16x32xf32>
      %16 = arith.addf %13, %15 : vector<16x32xf32>
      %c0_13 = arith.constant 0 : index
      %c0_14 = arith.constant 0 : index
      %17 = vector.load %arg6[%c0_13, %c0_14] : memref<16x32xf32, #tpu.memory_space<vmem>>, vector<16x32xf32>
      %18 = arith.addf %16, %17 : vector<16x32xf32>
      %cst_15 = arith.constant dense<0.000000e+00> : vector<16xf32>
      %19 = vector.multi_reduction <add>, %18, %cst_15 [1] : vector<16x32xf32> to vector<16xf32>
      %20 = vector.shape_cast %19 : vector<16xf32> to vector<16x1xf32>
      %cst_16 = arith.constant 3.200000e+01 : f32
      %21 = vector.broadcast %cst_16 : f32 to vector<16x1xf32>
      %22 = arith.divf %20, %21 : vector<16x1xf32>
      %23 = vector.broadcast %22 : vector<16x1xf32> to vector<16x32xf32>
      %24 = arith.subf %18, %23 : vector<16x32xf32>
      %25 = arith.mulf %24, %24 : vector<16x32xf32>
      %cst_17 = arith.constant dense<0.000000e+00> : vector<16xf32>
      %26 = vector.multi_reduction <add>, %25, %cst_17 [1] : vector<16x32xf32> to vector<16xf32>
      %27 = vector.shape_cast %26 : vector<16xf32> to vector<16x1xf32>
      %cst_18 = arith.constant 3.200000e+01 : f32
      %28 = vector.broadcast %cst_18 : f32 to vector<16x1xf32>
      %29 = arith.divf %27, %28 : vector<16x1xf32>
      %cst_19 = arith.constant 9.99999974E-6 : f32
      %30 = vector.broadcast %cst_19 : f32 to vector<16x1xf32>
      %31 = arith.addf %29, %30 : vector<16x1xf32>
      %32 = math.rsqrt %31 : vector<16x1xf32>
      %33 = vector.broadcast %32 : vector<16x1xf32> to vector<16x32xf32>
      %34 = arith.mulf %24, %33 : vector<16x32xf32>
      %c0_20 = arith.constant 0 : index
      %c0_21 = arith.constant 0 : index
      %35 = vector.load %arg7[%c0_20, %c0_21] : memref<1x32xf32, #tpu.memory_space<vmem>>, vector<1x32xf32>
      %36 = vector.broadcast %35 : vector<1x32xf32> to vector<16x32xf32>
      %37 = arith.mulf %34, %36 : vector<16x32xf32>
      %c0_22 = arith.constant 0 : index
      %c0_23 = arith.constant 0 : index
      %38 = vector.load %arg8[%c0_22, %c0_23] : memref<1x32xf32, #tpu.memory_space<vmem>>, vector<1x32xf32>
      %39 = vector.broadcast %38 : vector<1x32xf32> to vector<16x32xf32>
      %40 = arith.addf %37, %39 : vector<16x32xf32>
      %c0_24 = arith.constant 0 : index
      %c0_25 = arith.constant 0 : index
      %41 = vector.load %arg9[%c0_24, %c0_25] : memref<16x32xf32, #tpu.memory_space<vmem>>, vector<16x32xf32>
      tpu.vector_store %arg9[%c0_24, %c0_25], %40 {strides = array<i32>} : memref<16x32xf32, #tpu.memory_space<vmem>>, vector<16x32xf32>,
    } else {
    }
    return
  }
  func.func @transform_0(%arg0: i32, %arg1: i32, %arg2: i32) -> (i32, i32) {
    %c0_i32 = arith.constant 0 : i32
    return %arg0, %arg2 : i32, i32
  }
  func.func @transform_1(%arg0: i32, %arg1: i32, %arg2: i32) -> (i32, i32) {
    %c0_i32 = arith.constant 0 : i32
    %c0_i32_0 = arith.constant 0 : i32
    return %arg2, %c0_i32 : i32, i32
  }
  func.func @transform_2(%arg0: i32, %arg1: i32, %arg2: i32) -> (i32, i32) {
    %c0_i32 = arith.constant 0 : i32
    %c0_i32_0 = arith.constant 0 : i32
    %c0_i32_1 = arith.constant 0 : i32
    return %c0_i32, %c0_i32_0 : i32, i32
  }
  func.func @transform_3(%arg0: i32, %arg1: i32, %arg2: i32) -> (i32, i32) {
    %c0_i32 = arith.constant 0 : i32
    %c0_i32_0 = arith.constant 0 : i32
    return %arg0, %c0_i32 : i32, i32
  }
  func.func @transform_4(%arg0: i32, %arg1: i32, %arg2: i32) -> (i32, i32) {
    %c0_i32 = arith.constant 0 : i32
    %c0_i32_0 = arith.constant 0 : i32
    %c0_i32_1 = arith.constant 0 : i32
    return %c0_i32, %c0_i32_0 : i32, i32
  }
  func.func @transform_5(%arg0: i32, %arg1: i32, %arg2: i32) -> (i32, i32) {
    %c0_i32 = arith.constant 0 : i32
    %c0_i32_0 = arith.constant 0 : i32
    %c0_i32_1 = arith.constant 0 : i32
    return %c0_i32, %c0_i32_0 : i32, i32
  }
  func.func @transform_6(%arg0: i32, %arg1: i32, %arg2: i32) -> (i32, i32) {
    %c0_i32 = arith.constant 0 : i32
    %c0_i32_0 = arith.constant 0 : i32
    return %arg0, %c0_i32 : i32, i32
  }
}

module attributes {stable_mosaic.version = 11 : i64} {
  func.func @_linear_kernel(%arg0: i32, %arg1: i32, %arg2: i32, %arg3: memref<16x32xf32, #tpu.memory_space<vmem>>, %arg4: memref<32x128xbf16, #tpu.memory_space<vmem>>, %arg5: memref<1x128xf32, #tpu.memory_space<vmem>>, %arg6: memref<16x128xf32, #tpu.memory_space<vmem>>, %arg7: memref<16x128xf32, #tpu.memory_space<vmem>>) attributes {dimension_semantics = [#tpu.dimension_semantics<parallel>, #tpu.dimension_semantics<parallel>, #tpu.dimension_semantics<arbitrary>], iteration_bounds = array<i64: 1, 1, 1>, scalar_prefetch = 0 : i64, scratch_operands = 1 : i64, tpu.core_type = #tpu.core_type<tc>, window_params = [{transform_indices = @transform_0, window_bounds = array<i64: 16, 32>}, {transform_indices = @transform_1, window_bounds = array<i64: 32, 128>}, {transform_indices = @transform_2, window_bounds = array<i64: 1, 128>}, {transform_indices = @transform_3, window_bounds = array<i64: 16, 128>}]} {
    %c0_i32 = arith.constant 0 : i32
    %0 = arith.cmpi eq, %arg2, %c0_i32 : i32
    %1 = arith.extui %0 : i1 to i32
    %c0_i32_0 = arith.constant 0 : i32
    %2 = arith.cmpi ne, %1, %c0_i32_0 : i32
    scf.if %2 {
      %cst_10 = arith.constant 0.000000e+00 : f32
      %13 = vector.broadcast %cst_10 : f32 to vector<16x128xf32>
      %c0_11 = arith.constant 0 : index
      %c0_12 = arith.constant 0 : index
      %14 = vector.load %arg7[%c0_11, %c0_12] : memref<16x128xf32, #tpu.memory_space<vmem>>, vector<16x128xf32>
      tpu.vector_store %arg7[%c0_11, %c0_12], %13 {strides = array<i32>} : memref<16x128xf32, #tpu.memory_space<vmem>>, vector<16x128xf32>,
    } else {
    }
    %c0 = arith.constant 0 : index
    %c0_1 = arith.constant 0 : index
    %3 = vector.load %arg7[%c0, %c0_1] : memref<16x128xf32, #tpu.memory_space<vmem>>, vector<16x128xf32>
    %c0_2 = arith.constant 0 : index
    %c0_3 = arith.constant 0 : index
    %4 = vector.load %arg3[%c0_2, %c0_3] : memref<16x32xf32, #tpu.memory_space<vmem>>, vector<16x32xf32>
    %5 = arith.truncf %4 : vector<16x32xf32> to vector<16x32xbf16>
    %c0_4 = arith.constant 0 : index
    %c0_5 = arith.constant 0 : index
    %6 = vector.load %arg4[%c0_4, %c0_5] : memref<32x128xbf16, #tpu.memory_space<vmem>>, vector<32x128xbf16>
    %cst = arith.constant dense<0.000000e+00> : vector<16x128xf32>
    %7 = tpu.matmul %5, %6, %cst {dimension_numbers = #tpu.dot_dimension_numbers<[1], [0], [0], [1], [0, 0, 1, 1], [], []>} : vector<16x32xbf16>, vector<32x128xbf16>, vector<16x128xf32> -> vector<16x128xf32>
    %8 = arith.addf %3, %7 : vector<16x128xf32>
    %c0_6 = arith.constant 0 : index
    %c0_7 = arith.constant 0 : index
    %9 = vector.load %arg7[%c0_6, %c0_7] : memref<16x128xf32, #tpu.memory_space<vmem>>, vector<16x128xf32>
    tpu.vector_store %arg7[%c0_6, %c0_7], %8 {strides = array<i32>} : memref<16x128xf32, #tpu.memory_space<vmem>>, vector<16x128xf32>,
    %c0_i32_8 = arith.constant 0 : i32
    %10 = arith.cmpi eq, %arg2, %c0_i32_8 : i32
    %11 = arith.extui %10 : i1 to i32
    %c0_i32_9 = arith.constant 0 : i32
    %12 = arith.cmpi ne, %11, %c0_i32_9 : i32
    scf.if %12 {
      %c0_10 = arith.constant 0 : index
      %c0_11 = arith.constant 0 : index
      %13 = vector.load %arg7[%c0_10, %c0_11] : memref<16x128xf32, #tpu.memory_space<vmem>>, vector<16x128xf32>
      %c0_12 = arith.constant 0 : index
      %c0_13 = arith.constant 0 : index
      %14 = vector.load %arg5[%c0_12, %c0_13] : memref<1x128xf32, #tpu.memory_space<vmem>>, vector<1x128xf32>
      %15 = vector.broadcast %14 : vector<1x128xf32> to vector<16x128xf32>
      %16 = arith.addf %13, %15 : vector<16x128xf32>
      %c0_14 = arith.constant 0 : index
      %c0_15 = arith.constant 0 : index
      %17 = vector.load %arg6[%c0_14, %c0_15] : memref<16x128xf32, #tpu.memory_space<vmem>>, vector<16x128xf32>
      tpu.vector_store %arg6[%c0_14, %c0_15], %16 {strides = array<i32>} : memref<16x128xf32, #tpu.memory_space<vmem>>, vector<16x128xf32>,
    } else {
    }
    return
  }
  func.func @transform_0(%arg0: i32, %arg1: i32, %arg2: i32) -> (i32, i32) {
    %c0_i32 = arith.constant 0 : i32
    return %arg0, %arg2 : i32, i32
  }
  func.func @transform_1(%arg0: i32, %arg1: i32, %arg2: i32) -> (i32, i32) {
    %c0_i32 = arith.constant 0 : i32
    return %arg2, %arg1 : i32, i32
  }
  func.func @transform_2(%arg0: i32, %arg1: i32, %arg2: i32) -> (i32, i32) {
    %c0_i32 = arith.constant 0 : i32
    %c0_i32_0 = arith.constant 0 : i32
    return %c0_i32, %arg1 : i32, i32
  }
  func.func @transform_3(%arg0: i32, %arg1: i32, %arg2: i32) -> (i32, i32) {
    %c0_i32 = arith.constant 0 : i32
    return %arg0, %arg1 : i32, i32
  }
}

</mosaic_0001>

<bundles_post_ra>
// kernel: decoder_forward.24
= control target key start
LH: loop header
LB: loop body
LE: loop exit
PB: predicated region body
PF: predicated region fallthrough
CT: control target
= control target key end

     0   :  { %vm19_vm0 = vcmask 261120   ;;  %v131_v0 = vmov 0.0   ;;  %vm132_vm1 = vmmov 0   ;;  %s181_s1 = inlined_call_operand.vmem [shape: bf16[32,32], index: 1, kind: input, shape index: {}]   ;;  %s182_s0 = inlined_call_operand.vmem [shape: f32[16,32], index: 0, kind: input, shape index: {}]   ;;  %s183_s2 = inlined_call_operand.vmem [shape: f32[1,32], index: 2, kind: input, shape index: {}]   ;;  %s184_s3 = inlined_call_operand.vmem [shape: f32[16,32], index: 3, kind: output, shape index: {}]  }
   0x1   :  { %119 = vmatprep.subr.bf16.mxu0 %v131_v0  ;;  %v129_v1 = vld [vmem:[%s181_s1 + $0x8] sm:$0xff]   ;;  %123 = vmatprep.mubr.msk.bf16.mxu0 %vm132_vm1, %v131_v0  ;;  %20 = vst.msk [vmem:[#allocation2] sm:$0xff] %vm19_vm0, %v131_v0  ;;  %21 = vst.msk [vmem:[#allocation2 + $0x8] sm:$0xff] %vm19_vm0, %v131_v0  ;;  %v130_v2 = vld [vmem:[%s181_s1] sm:$0xff]  }
   0x2   :  { %120 = vmatpush3.bf16.msra.mxu0 %v129_v1  ;;  %v24_v3 = vld [vmem:[%s182_s0] sm:$0xff]  ;;  %v25_v4 = vld [vmem:[%s182_s0 + $0x8] sm:$0xff] }
   0x3   :  { %121 = vmatprep.subr.bf16.mxu0 %v131_v0  ;;  %v26_v5 = vpack.c.bf16 %v25_v4, %v24_v3  ;;  %v115_v14 = vld [vmem:[%s183_s2] ss:$0 sm:$0xff] }
   0x6   :  { %122 = vmatpush3.bf16.msra.mxu0 %v130_v2 }
   0x8   :  { %v22_v6 = vld [vmem:[#allocation2] sm:$0xff]  ;;  %v23_v10 = vld [vmem:[#allocation2 + $0x8] sm:$0xff] }
   0x9   :  { %124 = vmatmul.mubr.msk.bf16.vlgmr.msra.gmra.mxu0 %vm19_vm0, %v26_v5 }
  0xc9   :  { %v81_v7 = vpop.f32.mrf.mxu0 }
  0xca   :  { %v88_v8 = vadd.f32 %v81_v7, %v22_v6 }
  0xcb   :  { %v125_v9 = vpop.f32.mrf.mxu0 }
  0xcc   :  { %90 = vst.msk [vmem:[#allocation2] sm:$0xff] %vm19_vm0, %v88_v8 }
  0xcd   :  { %v84_v11 = vpop.f32.mrf.mxu0 }
  0xce   :  { %v89_v12 = vadd.f32 %v84_v11, %v23_v10 }
  0xcf   :  { %v126_v13 = vpop.f32.mrf.mxu0 }
  0xd0   :  { %91 = vst.msk [vmem:[#allocation2 + $0x8] sm:$0xff] %vm19_vm0, %v89_v12 }
  0xd3   :  { %v95_v15 = vld [vmem:[#allocation2] sm:$0xff] }
  0xd4   :  { %v104_v16 = vadd.f32 %v115_v14, %v95_v15 }
  0xd6   :  { %106 = vst.msk [vmem:[%s184_s3] sm:$0xff] %vm19_vm0, %v104_v16 }
  0xd7   :  { %v96_v17 = vld [vmem:[#allocation2 + $0x8] sm:$0xff] }
  0xd8   :  { %v105_v18 = vadd.f32 %v115_v14, %v96_v17 }
  0xda   :  { %107 = vst.msk [vmem:[%s184_s3 + $0x8] sm:$0xff] %vm19_vm0, %v105_v18 }

// kernel: decoder_forward.21
= control target key start
LH: loop header
LB: loop body
LE: loop exit
PB: predicated region body
PF: predicated region fallthrough
CT: control target
= control target key end

     0   :  { %vm19_vm0 = vcmask 785408   ;;  %v132_v0 = vmov 0.0   ;;  %vm133_vm1 = vmmov 0   ;;  %vm43_vm2 = vcmask 261120   ;;  %s181_s1 = inlined_call_operand.vmem [shape: bf16[32,96], index: 1, kind: input, shape index: {}]   ;;  %s182_s0 = inlined_call_operand.vmem [shape: f32[16,32], index: 0, kind: input, shape index: {}]   ;;  %s183_s2 = inlined_call_operand.vmem [shape: f32[1,96], index: 2, kind: input, shape index: {}]   ;;  %s184_s3 = inlined_call_operand.vmem [shape: f32[16,96], index: 3, kind: output, shape index: {}]  }
   0x1   :  { %120 = vmatprep.subr.bf16.mxu0 %v132_v0  ;;  %v130_v1 = vld [vmem:[%s181_s1 + $0x8] sm:$0xff]   ;;  %124 = vmatprep.mubr.msk.bf16.mxu0 %vm133_vm1, %v132_v0  ;;  %20 = vst.msk [vmem:[#allocation2] sm:$0xff] %vm19_vm0, %v132_v0  ;;  %21 = vst.msk [vmem:[#allocation2 + $0x8] sm:$0xff] %vm19_vm0, %v132_v0  ;;  %v131_v2 = vld [vmem:[%s181_s1] sm:$0xff]  }
   0x2   :  { %121 = vmatpush3.bf16.msra.mxu0 %v130_v1  ;;  %v24_v3 = vld [vmem:[%s182_s0] sm:$0xff]  ;;  %v25_v4 = vld [vmem:[%s182_s0 + $0x8] sm:$0xff] }
   0x3   :  { %122 = vmatprep.subr.bf16.mxu0 %v132_v0  ;;  %v26_v5 = vpack.c.bf16 %v25_v4, %v24_v3  ;;  %v116_v14 = vld [vmem:[%s183_s2] ss:$0 sm:$0xff] }
   0x6   :  { %123 = vmatpush3.bf16.msra.mxu0 %v131_v2 }
   0x8   :  { %v22_v6 = vld [vmem:[#allocation2] sm:$0xff]  ;;  %v23_v10 = vld [vmem:[#allocation2 + $0x8] sm:$0xff] }
   0x9   :  { %125 = vmatmul.mubr.msk.bf16.vlgmr.msra.gmra.mxu0 %vm43_vm2, %v26_v5 }
  0xc9   :  { %v81_v7 = vpop.f32.mrf.mxu0 }
  0xca   :  { %v88_v8 = vadd.f32 %v81_v7, %v22_v6 }
  0xcb   :  { %v126_v9 = vpop.f32.mrf.mxu0 }
  0xcc   :  { %91 = vst.msk [vmem:[#allocation2] sm:$0xff] %vm19_vm0, %v88_v8 }
  0xcd   :  { %v84_v11 = vpop.f32.mrf.mxu0 }
  0xce   :  { %v89_v12 = vadd.f32 %v84_v11, %v23_v10 }
  0xcf   :  { %v127_v13 = vpop.f32.mrf.mxu0 }
  0xd0   :  { %92 = vst.msk [vmem:[#allocation2 + $0x8] sm:$0xff] %vm19_vm0, %v89_v12 }
  0xd3   :  { %v96_v15 = vld [vmem:[#allocation2] sm:$0xff] }
  0xd4   :  { %v105_v16 = vadd.f32 %v116_v14, %v96_v15 }
  0xd6   :  { %107 = vst.msk [vmem:[%s184_s3] sm:$0xff] %vm19_vm0, %v105_v16 }
  0xd7   :  { %v97_v17 = vld [vmem:[#allocation2 + $0x8] sm:$0xff] }
  0xd8   :  { %v106_v18 = vadd.f32 %v116_v14, %v97_v17 }
  0xda   :  { %108 = vst.msk [vmem:[%s184_s3 + $0x8] sm:$0xff] %vm19_vm0, %v106_v18 }

// kernel: decoder_forward.23
= control target key start
LH: loop header
LB: loop body
LE: loop exit
PB: predicated region body
PF: predicated region fallthrough
CT: control target
= control target key end

     0   :  { %vm28_vm0 = vcmask 261120   ;;  %v195_v0 = vmov 0.0   ;;  %vm196_vm1 = vmmov 0   ;;  %s276_s1 = inlined_call_operand.vmem [shape: bf16[32,32], index: 1, kind: input, shape index: {}]   ;;  %s277_s0 = inlined_call_operand.vmem [shape: f32[16,32], index: 0, kind: input, shape index: {}]   ;;  %s278_s2 = inlined_call_operand.vmem [shape: f32[1,32], index: 2, kind: input, shape index: {}]   ;;  %s279_s3 = inlined_call_operand.vmem [shape: f32[16,32], index: 3, kind: input, shape index: {}]   ;;  %s280_s4 = inlined_call_operand.vmem [shape: f32[1,32], index: 4, kind: input, shape index: {}]   ;;  %s281_s5 = inlined_call_operand.vmem [shape: f32[1,32], index: 5, kind: input, shape index: {}]   ;;  %s282_s6 = inlined_call_operand.vmem [shape: f32[16,32], index: 6, kind: output, shape index: {}]  }
   0x1   :  { %179 = vmatprep.subr.bf16.mxu0 %v195_v0  ;;  %v189_v1 = vld [vmem:[%s276_s1 + $0x8] sm:$0xff]   ;;  %183 = vmatprep.mubr.msk.bf16.mxu0 %vm196_vm1, %v195_v0  ;;  %29 = vst.msk [vmem:[#allocation2] sm:$0xff] %vm28_vm0, %v195_v0  ;;  %30 = vst.msk [vmem:[#allocation2 + $0x8] sm:$0xff] %vm28_vm0, %v195_v0  ;;  %v190_v2 = vld [vmem:[%s276_s1] sm:$0xff]  }
   0x2   :  { %180 = vmatpush3.bf16.msra.mxu0 %v189_v1  ;;  %v33_v3 = vld [vmem:[%s277_s0] sm:$0xff]  ;;  %v34_v4 = vld [vmem:[%s277_s0 + $0x8] sm:$0xff] }
   0x3   :  { %181 = vmatprep.subr.bf16.mxu0 %v195_v0  ;;  %v35_v5 = vpack.c.bf16 %v34_v4, %v33_v3  ;;  %v173_v14 = vld [vmem:[%s278_s2] ss:$0 sm:$0xff]  ;;  %v116_v20 = vld [vmem:[%s279_s3 + $0x8] sm:$0xff] }
   0x4   :  { %v115_v16 = vld [vmem:[%s279_s3] sm:$0xff] }
   0x5   :  { %v174_v42 = vld [vmem:[%s280_s4] ss:$0 sm:$0xff] }
   0x6   :  { %182 = vmatpush3.bf16.msra.mxu0 %v190_v2  ;;  %v175_v44 = vld [vmem:[%s281_s5] ss:$0 sm:$0xff] }
   0x8   :  { %v31_v6 = vld [vmem:[#allocation2] sm:$0xff]  ;;  %v32_v10 = vld [vmem:[#allocation2 + $0x8] sm:$0xff] }
   0x9   :  { %184 = vmatmul.mubr.msk.bf16.vlgmr.msra.gmra.mxu0 %vm28_vm0, %v35_v5 }
  0xc9   :  { %v90_v7 = vpop.f32.mrf.mxu0 }
  0xca   :  { %v97_v8 = vadd.f32 %v90_v7, %v31_v6 }
  0xcb   :  { %v185_v9 = vpop.f32.mrf.mxu0 }
  0xcc   :  { %99 = vst.msk [vmem:[#allocation2] sm:$0xff] %vm28_vm0, %v97_v8 }
  0xcd   :  { %v93_v11 = vpop.f32.mrf.mxu0 }
  0xce   :  { %v98_v12 = vadd.f32 %v93_v11, %v32_v10 }
  0xcf   :  { %v186_v13 = vpop.f32.mrf.mxu0 }
  0xd0   :  { %100 = vst.msk [vmem:[#allocation2 + $0x8] sm:$0xff] %vm28_vm0, %v98_v12 }
  0xd3   :  { %v104_v15 = vld [vmem:[#allocation2] sm:$0xff] }
  0xd4   :  { %v113_v17 = vadd.f32 %v173_v14, %v104_v15 }
  0xd6   :  { %v117_v18 = vadd.f32 %v115_v16, %v113_v17 }
  0xd7   :  { %v105_v19 = vld [vmem:[#allocation2 + $0x8] sm:$0xff] }
  0xd8   :  { %v119_v21 = vsel %vm28_vm0, %v117_v18, 0.0  ;;  %v114_v22 = vadd.f32 %v173_v14, %v105_v19 }
  0xd9   :  { %120 = vadd.xlane.f32.xlu0 %v119_v21 }
  0xda   :  { %v118_v23 = vadd.f32 %v116_v20, %v114_v22 }
  0xdc   :  { %v122_v24 = vsel %vm28_vm0, %v118_v23, 0.0 }
  0xdd   :  { %123 = vadd.xlane.f32.xlu0 %v122_v24 }
 0x162   :  { %v121_v25 = vpop.xlane.xlu0 %120 }
 0x163   :  { %v126_v26 = vmul.f32 0.03125, %v121_v25 }
 0x165   :  { %v128_v27 = vsub.f32 %v117_v18, %v126_v26 }
 0x166   :  { %v124_v28 = vpop.xlane.xlu0 %123 }
 0x167   :  { %v127_v29 = vmul.f32 0.03125, %v124_v28  ;;  %v130_v30 = vmul.f32 %v128_v27, %v128_v27 }
 0x169   :  { %v129_v31 = vsub.f32 %v118_v23, %v127_v29  ;;  %v132_v32 = vsel %vm28_vm0, %v130_v30, 0.0 }
 0x16a   :  { %133 = vadd.xlane.f32.xlu1 %v132_v32 }
 0x16b   :  { %v131_v33 = vmul.f32 %v129_v31, %v129_v31 }
 0x16d   :  { %v135_v34 = vsel %vm28_vm0, %v131_v33, 0.0 }
 0x16e   :  { %136 = vadd.xlane.f32.xlu1 %v135_v34 }
 0x1f3   :  { %v134_v35 = vpop.xlane.xlu1 %133 }
 0x1f4   :  { %v138_v36 = vmul.f32 0.03125, %v134_v35 }
 0x1f6   :  { %v140_v37 = vadd.f32 1e-05, %v138_v36 }
 0x1f7   :  { %v137_v38 = vpop.xlane.xlu1 %136 }
 0x1f8   :  { %191 = vrsqrt.f32 %v140_v37  ;;  %v139_v39 = vmul.f32 0.03125, %v137_v38 }
 0x1fa   :  { %v141_v40 = vadd.f32 1e-05, %v139_v39 }
 0x1fc   :  { %193 = vrsqrt.f32 %v141_v40 }
 0x205   :  { %v192_v41 = vpop.eup %191 }
 0x206   :  { %v144_v43 = vmul.f32 %v192_v41, %v128_v27 }
 0x208   :  { %v153_v45 = vmul.f32 %v174_v42, %v144_v43 }
 0x209   :  { %v194_v46 = vpop.eup %193 }
 0x20a   :  { %v162_v47 = vadd.f32 %v175_v44, %v153_v45  ;;  %v145_v48 = vmul.f32 %v194_v46, %v129_v31 }
 0x20c   :  { %164 = vst.msk [vmem:[%s282_s6] sm:$0xff] %vm28_vm0, %v162_v47  ;;  %v154_v49 = vmul.f32 %v174_v42, %v145_v48 }
 0x20e   :  { %v163_v50 = vadd.f32 %v175_v44, %v154_v49 }
 0x210   :  { %165 = vst.msk [vmem:[%s282_s6 + $0x8] sm:$0xff] %vm28_vm0, %v163_v50 }

// kernel: decoder_forward.22
= control target key start
LH: loop header
LB: loop body
LE: loop exit
PB: predicated region body
PF: predicated region fallthrough
CT: control target
= control target key end

     0   :  { %s1425_s12 = smov 0   ;;  %s1630_s0 = inlined_call_operand.vmem [shape: f32[2,8,8,4], index: 0, kind: input, shape index: {}]   ;;  %s1631_s1 = inlined_call_operand.vmem [shape: f32[2,8,8,4], index: 1, kind: input, shape index: {}]   ;;  %s1632_s2 = inlined_call_operand.vmem [shape: f32[2,8,8,4], index: 2, kind: input, shape index: {}]   ;;  %s1633_s3 = inlined_call_operand.vmem [shape: f32[2,8,8,4], index: 3, kind: output, shape index: {}]  }
   0x1 LB: > { %s1190_s13 = sadd.s32 4294967295, %s1401_s12   ;;  %p1194_p0 = scmp.ge.s32.totalorder %s1401_s12, 1  ;;  %s1401_s12 = sphi %s1425_s12, %s13_s12  }
   0x2   : > { %p157_p1 = scmp.lt.s32.totalorder %s1401_s12, 3 }
   0x4   : > { %p158_p2 = pnand %p1194_p0, %p157_p1 }
   0x5   : > { %p191_p3 = scmp.lt.s32.totalorder (!%p158_p2), %s1190_s13, 1 }
   0x6   : > { %161 = sbr.rel (%p158_p2) target bundleno = 761 (0x2f9), region = 32 }
   0xb   : > { %v1403_v0 = vmov 0.0   ;;  %s1635_s13 = smov (!%p191_p3, %s1190_s13), 1  ;;  %vm1404_vm0 = vmmov 0   ;;  %vm260_vm1 = vcmask 31744   ;;  %vm637_vm2 = vcmask 64512  }
   0xc   : > { %1257 = vmatprep.subr.bf16.mxu0 %v1403_v0  ;;  %1263 = vmatprep.subr.bf16.mxu1 %v1403_v0  ;;  %s1439_s14 = sshll.u32 %s1635_s13, 6  ;;  %vm737_vm3 = vcmask 1043456  }
   0xd   : > { %1259 = vmatprep.mubr.msk.bf16.mxu0 %vm1404_vm0, %v1403_v0  ;;  %1265 = vmatprep.mubr.msk.bf16.mxu1 %vm1404_vm0, %v1403_v0  ;;  %s1445_s17 = scalar_lea.vmem %s1631_s1, %s1439_s14  ;;  %s1453_s20 = scalar_lea.vmem %s1630_s0, %s1439_s14 }
   0xe   : > { %v228_v1 = vld [vmem:[%s1445_s17] sm:$0xff]  ;;  %v229_v2 = vld [vmem:[%s1445_s17 + $0x8] sm:$0xff]  ;;  %v230_v5 = vld [vmem:[%s1445_s17 + $0x10] sm:$0xff]  ;;  %s1545_s23 = scalar_lea.vmem %s1632_s2, %s1439_s14  ;;  %s1609_s26 = scalar_lea.vmem %s1633_s3, %s1439_s14 }
   0xf   : > { %v236_v3 = vpack.c.bf16 %v228_v1, %v228_v1  ;;  %v237_v4 = vpack.c.bf16 %v229_v2, %v229_v2  ;;  %v231_v6 = vld [vmem:[%s1445_s17 + $0x18] sm:$0xff]  ;;  %v212_v9 = vld [vmem:[%s1453_s20] sm:$0xff]  ;;  %v213_v10 = vld [vmem:[%s1453_s20 + $0x8] sm:$0xff]  ;;  %v238_v11 = vpack.c.bf16 %v230_v5, %v230_v5 }
  0x10   : > { %v239_v12 = vpack.c.bf16 %v231_v6, %v231_v6  ;;  %v220_v13 = vpack.c.bf16 %v212_v9, %v212_v9  ;;  %v221_v14 = vpack.c.bf16 %v213_v10, %v213_v10  ;;  %v232_v17 = vld [vmem:[%s1445_s17 + $0x20] sm:$0xff]  ;;  %v233_v18 = vld [vmem:[%s1445_s17 + $0x28] sm:$0xff]  ;;  %v214_v19 = vld [vmem:[%s1453_s20 + $0x10] sm:$0xff] }
  0x11   : > { %v265_v7 = vsel %vm260_vm1, %v236_v3, 0  ;;  %v311_v8 = vsel %vm260_vm1, %v237_v4, 0  ;;  %v357_v15 = vsel %vm260_vm1, %v238_v11, 0  ;;  %v215_v20 = vld [vmem:[%s1453_s20 + $0x18] sm:$0xff]  ;;  %v240_v21 = vpack.c.bf16 %v232_v17, %v232_v17  ;;  %v234_v27 = vld [vmem:[%s1445_s17 + $0x30] sm:$0xff]  ;;  %v216_v29 = vld [vmem:[%s1453_s20 + $0x20] sm:$0xff] }
  0x12   : > { %1258 = vmatpush3.bf16.xpose.msra.mxu0 %v265_v7  ;;  %1264 = vmatpush3.bf16.xpose.msra.mxu1 %v311_v8  ;;  %v403_v16 = vsel %vm260_vm1, %v239_v12, 0  ;;  %v241_v22 = vpack.c.bf16 %v233_v18, %v233_v18  ;;  %v222_v23 = vpack.c.bf16 %v214_v19, %v214_v19  ;;  %v223_v24 = vpack.c.bf16 %v215_v20, %v215_v20  ;;  %v235_v28 = vld [vmem:[%s1445_s17 + $0x38] sm:$0xff]  ;;  %v217_v30 = vld [vmem:[%s1453_s20 + $0x28] sm:$0xff]  ;;  %v218_v37 = vld [vmem:[%s1453_s20 + $0x30] sm:$0xff] }
  0x13   : > { %1269 = vmatprep.subr.bf16.mxu0 %v1403_v0  ;;  %1275 = vmatprep.subr.bf16.mxu1 %v1403_v0  ;;  %v449_v25 = vsel %vm260_vm1, %v240_v21, 0  ;;  %v242_v31 = vpack.c.bf16 %v234_v27, %v234_v27  ;;  %v243_v32 = vpack.c.bf16 %v235_v28, %v235_v28  ;;  %v224_v33 = vpack.c.bf16 %v216_v29, %v216_v29  ;;  %v219_v38 = vld [vmem:[%s1453_s20 + $0x38] sm:$0xff] }
  0x14   : > { %v495_v26 = vsel %vm260_vm1, %v241_v22, 0  ;;  %v225_v34 = vpack.c.bf16 %v217_v30, %v217_v30  ;;  %v226_v39 = vpack.c.bf16 %v218_v37, %v218_v37  ;;  %v227_v40 = vpack.c.bf16 %v219_v38, %v219_v38 }
  0x15   : > { %v541_v35 = vsel %vm260_vm1, %v242_v31, 0  ;;  %v587_v36 = vsel %vm260_vm1, %v243_v32, 0 }
  0x19   : > { %1260 = vmatmul.mubr.msk.bf16.vlgmr.msra.gmra.mxu0 %vm260_vm1, %v220_v13  ;;  %1266 = vmatmul.mubr.msk.bf16.vlgmr.msra.gmra.mxu1 %vm260_vm1, %v221_v14 }
  0x1a   : > { %1270 = vmatpush3.bf16.xpose.msra.mxu0 %v357_v15  ;;  %1276 = vmatpush3.bf16.xpose.msra.mxu1 %v403_v16 }
  0x1b   : > { %1271 = vmatprep.mubr.msk.bf16.mxu0 %vm1404_vm0, %v1403_v0  ;;  %1277 = vmatprep.mubr.msk.bf16.mxu1 %vm1404_vm0, %v1403_v0 }
  0x1c   : > { %1281 = vmatprep.subr.bf16.mxu0 %v1403_v0  ;;  %1287 = vmatprep.subr.bf16.mxu1 %v1403_v0 }
  0x21   : > { %1272 = vmatmul.mubr.msk.bf16.vlgmr.msra.gmra.mxu0 %vm260_vm1, %v222_v23  ;;  %1278 = vmatmul.mubr.msk.bf16.vlgmr.msra.gmra.mxu1 %vm260_vm1, %v223_v24 }
  0x22   : > { %1282 = vmatpush3.bf16.xpose.msra.mxu0 %v449_v25  ;;  %1288 = vmatpush3.bf16.xpose.msra.mxu1 %v495_v26 }
  0x23   : > { %1283 = vmatprep.mubr.msk.bf16.mxu0 %vm1404_vm0, %v1403_v0  ;;  %1289 = vmatprep.mubr.msk.bf16.mxu1 %vm1404_vm0, %v1403_v0 }
  0x24   : > { %1293 = vmatprep.subr.bf16.mxu0 %v1403_v0  ;;  %1299 = vmatprep.subr.bf16.mxu1 %v1403_v0 }
  0x29   : > { %1284 = vmatmul.mubr.msk.bf16.vlgmr.msra.gmra.mxu0 %vm260_vm1, %v224_v33  ;;  %1290 = vmatmul.mubr.msk.bf16.vlgmr.msra.gmra.mxu1 %vm260_vm1, %v225_v34 }
  0x2a   : > { %1294 = vmatpush3.bf16.xpose.msra.mxu0 %v541_v35  ;;  %1300 = vmatpush3.bf16.xpose.msra.mxu1 %v587_v36 }
  0x2b   : > { %1295 = vmatprep.mubr.msk.bf16.mxu0 %vm1404_vm0, %v1403_v0  ;;  %1301 = vmatprep.mubr.msk.bf16.mxu1 %vm1404_vm0, %v1403_v0 }
  0x2c   : > { %1305 = vmatprep.subr.bf16.mxu0 %v1403_v0  ;;  %1311 = vmatprep.subr.bf16.mxu1 %v1403_v0 }
  0x31   : > { %1296 = vmatmul.mubr.msk.bf16.vlgmr.msra.gmra.mxu0 %vm260_vm1, %v226_v39  ;;  %1302 = vmatmul.mubr.msk.bf16.vlgmr.msra.gmra.mxu1 %vm260_vm1, %v227_v40 }
  0x32   : > { %1307 = vmatprep.mubr.msk.bf16.mxu0 %vm1404_vm0, %v1403_v0  ;;  %1313 = vmatprep.mubr.msk.bf16.mxu1 %vm1404_vm0, %v1403_v0 }
  0xd9   : > { %v301_v41 = vpop.f32.mrf.mxu0  ;;  %v347_v42 = vpop.f32.mrf.mxu1 }
  0xda   : > { %v629_v43 = vmul.f32 0.5, %v301_v41  ;;  %v630_v44 = vmul.f32 0.5, %v347_v42 }
  0xdb   : > { %v1261_v45 = vpop.f32.mrf.mxu0  ;;  %v1267_v46 = vpop.f32.mrf.mxu1 }
  0xdc   : > { %v638_v47 = vsel %vm637_vm2, %v629_v43, -inf  ;;  %v641_v50 = vsel %vm637_vm2, %v630_v44, -inf }
  0xdd   : > { %v350_v48 = vpop.f32.mrf.mxu1  ;;  %639 = vmax.xlane.f32.xlu0 %v638_v47  ;;  %v304_v49 = vpop.f32.mrf.mxu0 }
  0xdf   : > { %v1262_v51 = vpop.f32.mrf.mxu0  ;;  %v1268_v52 = vpop.f32.mrf.mxu1 }
  0xe1   : > { %v439_v53 = vpop.f32.mrf.mxu1  ;;  %642 = vmax.xlane.f32.xlu0 %v641_v50  ;;  %v393_v54 = vpop.f32.mrf.mxu0 }
  0xe2   : > { %v632_v55 = vmul.f32 0.5, %v439_v53  ;;  %v631_v56 = vmul.f32 0.5, %v393_v54 }
  0xe3   : > { %v1273_v57 = vpop.f32.mrf.mxu0  ;;  %v1279_v58 = vpop.f32.mrf.mxu1 }
  0xe4   : > { %v644_v59 = vsel %vm637_vm2, %v631_v56, -inf  ;;  %v647_v62 = vsel %vm637_vm2, %v632_v55, -inf }
  0xe5   : > { %v442_v60 = vpop.f32.mrf.mxu1  ;;  %645 = vmax.xlane.f32.xlu1 %v644_v59  ;;  %v396_v61 = vpop.f32.mrf.mxu0 }
  0xe7   : > { %v1274_v63 = vpop.f32.mrf.mxu0  ;;  %v1280_v1 = vpop.f32.mrf.mxu1 }
  0xe8   : > { %v244_v63 = vld [vmem:[%s1545_s23] sm:$0xff]  ;;  %v245_v1 = vld [vmem:[%s1545_s23 + $0x8] sm:$0xff] }
  0xe9   : > { %v531_v2 = vpop.f32.mrf.mxu1  ;;  %648 = vmax.xlane.f32.xlu1 %v647_v62  ;;  %v485_v3 = vpop.f32.mrf.mxu0 }
  0xea   : > { %v634_v4 = vmul.f32 0.5, %v531_v2  ;;  %v633_v5 = vmul.f32 0.5, %v485_v3 }
  0xeb   : > { %v1285_v6 = vpop.f32.mrf.mxu0  ;;  %v1291_v7 = vpop.f32.mrf.mxu1 }
  0xec   : > { %v653_v8 = vsel %vm637_vm2, %v634_v4, -inf  ;;  %v650_v9 = vsel %vm637_vm2, %v633_v5, -inf }
  0xed   : > { %v534_v10 = vpop.f32.mrf.mxu1  ;;  %654 = vmax.xlane.f32.xlu1 %v653_v8  ;;  %651 = vmax.xlane.f32.xlu0 %v650_v9  ;;  %v488_v11 = vpop.f32.mrf.mxu0  ;;  %v246_v9 = vld [vmem:[%s1545_s23 + $0x10] sm:$0xff] }
  0xee   : > { %v254_v10 = vpack.c.bf16 %v246_v9, %v246_v9  ;;  %v247_v11 = vld [vmem:[%s1545_s23 + $0x18] sm:$0xff] }
  0xef   : > { %v1286_v12 = vpop.f32.mrf.mxu0  ;;  %v1292_v13 = vpop.f32.mrf.mxu1 }
  0xf0   : > { %v255_v12 = vpack.c.bf16 %v247_v11, %v247_v11  ;;  %v831_v13 = vsel %vm737_vm3, %v254_v10, 0 }
  0xf1   : > { %v577_v14 = vpop.f32.mrf.mxu0  ;;  %v623_v15 = vpop.f32.mrf.mxu1 }
  0xf2   : > { %v635_v16 = vmul.f32 0.5, %v577_v14  ;;  %v636_v17 = vmul.f32 0.5, %v623_v15  ;;  %v877_v14 = vsel %vm737_vm3, %v255_v12, 0  ;;  %v248_v15 = vld [vmem:[%s1545_s23 + $0x20] sm:$0xff] }
  0xf3   : > { %v1297_v18 = vpop.f32.mrf.mxu0  ;;  %v1303_v19 = vpop.f32.mrf.mxu1 }
  0xf4   : > { %v659_v20 = vsel %vm637_vm2, %v636_v17, -inf  ;;  %v656_v21 = vsel %vm637_vm2, %v635_v16, -inf }
  0xf5   : > { %v626_v22 = vpop.f32.mrf.mxu1  ;;  %660 = vmax.xlane.f32.xlu1 %v659_v20  ;;  %657 = vmax.xlane.f32.xlu0 %v656_v21  ;;  %v580_v23 = vpop.f32.mrf.mxu0  ;;  %v250_v21 = vld [vmem:[%s1545_s23 + $0x30] sm:$0xff] }
  0xf6   : > { %v258_v22 = vpack.c.bf16 %v250_v21, %v250_v21  ;;  %v251_v23 = vld [vmem:[%s1545_s23 + $0x38] sm:$0xff] }
  0xf7   : > { %v1298_v24 = vpop.f32.mrf.mxu0  ;;  %v1304_v25 = vpop.f32.mrf.mxu1 }
  0xf8   : > { %v1015_v24 = vsel %vm737_vm3, %v258_v22, 0  ;;  %v259_v25 = vpack.c.bf16 %v251_v23, %v251_v23 }
 0x166   : > { %v640_v26 = vpop.xlane.xlu0 %639 }
 0x167   : > { %v662_v27 = vsub.f32 %v629_v43, %v640_v26  ;;  %v1061_v26 = vsel %vm737_vm3, %v259_v25, 0 }
 0x169   : > { %v670_v28 = vmul.f32 1.442695, %v662_v27 }
 0x16a   : > { %v643_v29 = vpop.xlane.xlu0 %642 }
 0x16b   : > { %1363 = vpow2.f32 %v670_v28  ;;  %v663_v30 = vsub.f32 %v630_v44, %v643_v29 }
 0x16d   : > { %v672_v31 = vmul.f32 1.442695, %v663_v30 }
 0x16e   : > { %v646_v32 = vpop.xlane.xlu1 %645 }
 0x16f   : > { %1365 = vpow2.f32 %v672_v31  ;;  %v664_v33 = vsub.f32 %v631_v56, %v646_v32 }
 0x171   : > { %v674_v34 = vmul.f32 1.442695, %v664_v33 }
 0x172   : > { %v649_v35 = vpop.xlane.xlu1 %648 }
 0x173   : > { %1367 = vpow2.f32 %v674_v34  ;;  %v665_v36 = vsub.f32 %v632_v55, %v649_v35 }
 0x175   : > { %v676_v37 = vmul.f32 1.442695, %v665_v36 }
 0x176   : > { %v655_v38 = vpop.xlane.xlu1 %654  ;;  %v652_v39 = vpop.xlane.xlu0 %651 }
 0x177   : > { %1369 = vpow2.f32 %v676_v37  ;;  %v667_v40 = vsub.f32 %v634_v4, %v655_v38  ;;  %v666_v41 = vsub.f32 %v633_v5, %v652_v39  ;;  %v252_v4 = vpack.c.bf16 %v244_v63, %v244_v63 }
 0x178   : > { %v1517_v42 = vpop.eup %1363  ;;  %v253_v5 = vpack.c.bf16 %v245_v1, %v245_v1 }
 0x179   : > { %v680_v43 = vmul.f32 1.442695, %v667_v40  ;;  %v678_v45 = vmul.f32 1.442695, %v666_v41  ;;  %v686_v44 = vsel %vm637_vm2, %v1517_v42, 0.0  ;;  %v739_v7 = vsel %vm737_vm3, %v252_v4, 0 }
 0x17a   : > { %687 = vadd.xlane.f32.xlu0 %v686_v44  ;;  %v785_v8 = vsel %vm737_vm3, %v253_v5, 0  ;;  %1306 = vmatpush3.bf16.msra.mxu0 %v739_v7 }
 0x17b   : > { %1371 = vpow2.f32 %v680_v43  ;;  %1312 = vmatpush3.bf16.msra.mxu1 %v785_v8  ;;  %1317 = vmatprep.subr.bf16.mxu0 %v1403_v0 }
 0x17c   : > { %v1521_v46 = vpop.eup %1365  ;;  %1373 = vpow2.f32 %v678_v45  ;;  %1323 = vmatprep.subr.bf16.mxu1 %v1403_v0 }
 0x17d   : > { %v689_v47 = vsel %vm637_vm2, %v1521_v46, 0.0 }
 0x17e   : > { %690 = vadd.xlane.f32.xlu1 %v689_v47  ;;  %v661_v48 = vpop.xlane.xlu1 %660  ;;  %v658_v49 = vpop.xlane.xlu0 %657 }
 0x17f   : > { %v669_v50 = vsub.f32 %v636_v17, %v661_v48  ;;  %v668_v51 = vsub.f32 %v635_v16, %v658_v49  ;;  %v256_v16 = vpack.c.bf16 %v248_v15, %v248_v15  ;;  %v249_v17 = vld [vmem:[%s1545_s23 + $0x28] sm:$0xff] }
 0x180   : > { %v1525_v52 = vpop.eup %1367  ;;  %v257_v19 = vpack.c.bf16 %v249_v17, %v249_v17 }
 0x181   : > { %v684_v53 = vmul.f32 1.442695, %v669_v50  ;;  %v682_v54 = vmul.f32 1.442695, %v668_v51  ;;  %v692_v55 = vsel %vm637_vm2, %v1525_v52, 0.0  ;;  %v923_v18 = vsel %vm737_vm3, %v256_v16, 0 }
 0x182   : > { %693 = vadd.xlane.f32.xlu0 %v692_v55  ;;  %v969_v20 = vsel %vm737_vm3, %v257_v19, 0 }
 0x183   : > { %1375 = vpow2.f32 %v684_v53 }
 0x184   : > { %v1529_v56 = vpop.eup %1369  ;;  %1377 = vpow2.f32 %v682_v54 }
 0x185   : > { %v695_v57 = vsel %vm637_vm2, %v1529_v56, 0.0 }
 0x186   : > { %696 = vadd.xlane.f32.xlu1 %v695_v57 }
 0x188   : > { %v1533_v58 = vpop.eup %1371 }
 0x189   : > { %v1535_v59 = vpop.eup %1373  ;;  %v701_v60 = vsel %vm637_vm2, %v1533_v58, 0.0 }
 0x18a   : > { %702 = vadd.xlane.f32.xlu1 %v701_v60  ;;  %v698_v61 = vsel %vm637_vm2, %v1535_v59, 0.0 }
 0x18b   : > { %699 = vadd.xlane.f32.xlu0 %v698_v61 }
 0x190   : > { %v1547_v62 = vpop.eup %1375 }
 0x191   : > { %v1551_v2 = vpop.eup %1377  ;;  %v707_v3 = vsel %vm637_vm2, %v1547_v62, 0.0 }
 0x192   : > { %708 = vadd.xlane.f32.xlu1 %v707_v3  ;;  %v704_v6 = vsel %vm637_vm2, %v1551_v2, 0.0 }
 0x193   : > { %705 = vadd.xlane.f32.xlu0 %v704_v6 }
 0x203   : > { %v688_v27 = vpop.xlane.xlu0 %687 }
 0x204   : > { %1379 = vrcp.f32 %v688_v27 }
 0x207   : > { %v691_v28 = vpop.xlane.xlu1 %690 }
 0x208   : > { %1381 = vrcp.f32 %v691_v28 }
 0x20b   : > { %v694_v29 = vpop.xlane.xlu0 %693 }
 0x20c   : > { %1383 = vrcp.f32 %v694_v29 }
 0x20f   : > { %v697_v30 = vpop.xlane.xlu1 %696 }
 0x210   : > { %1385 = vrcp.f32 %v697_v30 }
 0x211   : > { %v1380_v31 = vpop.eup %1379 }
 0x212   : > { %v718_v32 = vmul.f32 %v1380_v31, %v1517_v42 }
 0x213   : > { %v703_v33 = vpop.xlane.xlu1 %702 }
 0x214   : > { %1387 = vrcp.f32 %v703_v33  ;;  %v700_v34 = vpop.xlane.xlu0 %699  ;;  %v726_v35 = vpack.c.bf16 %v718_v32, %v718_v32 }
 0x215   : > { %v1382_v36 = vpop.eup %1381  ;;  %1389 = vrcp.f32 %v700_v34 }
 0x216   : > { %1308 = vmatmul.mubr.msk.bf16.vlgmr.msra.gmra.mxu0 %vm637_vm2, %v726_v35  ;;  %v719_v37 = vmul.f32 %v1382_v36, %v1521_v46 }
 0x217   : > { %1318 = vmatpush3.bf16.msra.mxu0 %v831_v13  ;;  %1319 = vmatprep.mubr.msk.bf16.mxu0 %vm1404_vm0, %v1403_v0 }
 0x218   : > { %v727_v38 = vpack.c.bf16 %v719_v37, %v719_v37  ;;  %1329 = vmatprep.subr.bf16.mxu0 %v1403_v0 }
 0x219   : > { %v1384_v39 = vpop.eup %1383 }
 0x21a   : > { %1314 = vmatmul.mubr.msk.bf16.vlgmr.msra.gmra.mxu1 %vm637_vm2, %v727_v38  ;;  %v720_v40 = vmul.f32 %v1384_v39, %v1525_v52 }
 0x21b   : > { %1324 = vmatpush3.bf16.msra.mxu1 %v877_v14  ;;  %v709_v41 = vpop.xlane.xlu1 %708  ;;  %1325 = vmatprep.mubr.msk.bf16.mxu1 %vm1404_vm0, %v1403_v0 }
 0x21c   : > { %1391 = vrcp.f32 %v709_v41  ;;  %v706_v42 = vpop.xlane.xlu0 %705  ;;  %v728_v43 = vpack.c.bf16 %v720_v40, %v720_v40  ;;  %1335 = vmatprep.subr.bf16.mxu1 %v1403_v0 }
 0x21d   : > { %v1386_v45 = vpop.eup %1385  ;;  %1393 = vrcp.f32 %v706_v42 }
 0x21e   : > { %1320 = vmatmul.mubr.msk.bf16.vlgmr.msra.gmra.mxu0 %vm637_vm2, %v728_v43  ;;  %v721_v44 = vmul.f32 %v1386_v45, %v1529_v56 }
 0x21f   : > { %1330 = vmatpush3.bf16.msra.mxu0 %v923_v18  ;;  %1331 = vmatprep.mubr.msk.bf16.mxu0 %vm1404_vm0, %v1403_v0 }
 0x220   : > { %v729_v46 = vpack.c.bf16 %v721_v44, %v721_v44  ;;  %1341 = vmatprep.subr.bf16.mxu0 %v1403_v0 }
 0x221   : > { %v1388_v47 = vpop.eup %1387 }
 0x222   : > { %v1390_v48 = vpop.eup %1389  ;;  %1326 = vmatmul.mubr.msk.bf16.vlgmr.msra.gmra.mxu1 %vm637_vm2, %v729_v46  ;;  %v723_v50 = vmul.f32 %v1388_v47, %v1533_v58 }
 0x223   : > { %1336 = vmatpush3.bf16.msra.mxu1 %v969_v20  ;;  %v722_v49 = vmul.f32 %v1390_v48, %v1535_v59  ;;  %1337 = vmatprep.mubr.msk.bf16.mxu1 %vm1404_vm0, %v1403_v0 }
 0x224   : > { %1347 = vmatprep.subr.bf16.mxu1 %v1403_v0  ;;  %v731_v52 = vpack.c.bf16 %v723_v50, %v723_v50 }
 0x225   : > { %v730_v51 = vpack.c.bf16 %v722_v49, %v722_v49 }
 0x227   : > { %1332 = vmatmul.mubr.msk.bf16.vlgmr.msra.gmra.mxu0 %vm637_vm2, %v730_v51 }
 0x228   : > { %1342 = vmatpush3.bf16.msra.mxu0 %v1015_v24  ;;  %1343 = vmatprep.mubr.msk.bf16.mxu0 %vm1404_vm0, %v1403_v0 }
 0x229   : > { %v1392_v53 = vpop.eup %1391 }
 0x22a   : > { %v1394_v54 = vpop.eup %1393  ;;  %1338 = vmatmul.mubr.msk.bf16.vlgmr.msra.gmra.mxu1 %vm637_vm2, %v731_v52  ;;  %v725_v56 = vmul.f32 %v1392_v53, %v1547_v62 }
 0x22b   : > { %1348 = vmatpush3.bf16.msra.mxu1 %v1061_v26  ;;  %v724_v55 = vmul.f32 %v1394_v54, %v1551_v2  ;;  %1349 = vmatprep.mubr.msk.bf16.mxu1 %vm1404_vm0, %v1403_v0 }
 0x22c   : > { %v733_v58 = vpack.c.bf16 %v725_v56, %v725_v56 }
 0x22d   : > { %v732_v57 = vpack.c.bf16 %v724_v55, %v724_v55 }
 0x22f   : > { %1344 = vmatmul.mubr.msk.bf16.vlgmr.msra.gmra.mxu0 %vm637_vm2, %v732_v57 }
 0x232   : > { %1350 = vmatmul.mubr.msk.bf16.vlgmr.msra.gmra.mxu1 %vm637_vm2, %v733_v58 }
 0x2d6   : > { %v775_v59 = vpop.f32.mrf.mxu0 }
 0x2d7   : > { %1103 = vst.msk [vmem:[%s1609_s26] sm:$0xff] %vm260_vm1, %v775_v59 }
 0x2d8   : > { %v1309_v0 = vpop.f32.mrf.mxu0 }
 0x2da   : > { %v778_v60 = vpop.f32.mrf.mxu0  ;;  %v821_v61 = vpop.f32.mrf.mxu1 }
 0x2db   : > { %1104 = vst.msk [vmem:[%s1609_s26 + $0x8] sm:$0xff] %vm260_vm1, %v821_v61 }
 0x2dc   : > { %v1310_v62 = vpop.f32.mrf.mxu0  ;;  %v1315_v63 = vpop.f32.mrf.mxu1 }
 0x2de   : > { %v824_v1 = vpop.f32.mrf.mxu1  ;;  %v867_v2 = vpop.f32.mrf.mxu0 }
 0x2df   : > { %1105 = vst.msk [vmem:[%s1609_s26 + $0x10] sm:$0xff] %vm260_vm1, %v867_v2 }
 0x2e0   : > { %v1316_v3 = vpop.f32.mrf.mxu1  ;;  %v1321_v4 = vpop.f32.mrf.mxu0 }
 0x2e2   : > { %v870_v5 = vpop.f32.mrf.mxu0  ;;  %v913_v6 = vpop.f32.mrf.mxu1 }
 0x2e3   : > { %1106 = vst.msk [vmem:[%s1609_s26 + $0x18] sm:$0xff] %vm260_vm1, %v913_v6 }
 0x2e4   : > { %v1322_v7 = vpop.f32.mrf.mxu0  ;;  %v1327_v8 = vpop.f32.mrf.mxu1 }
 0x2e6   : > { %v916_v9 = vpop.f32.mrf.mxu1 }
 0x2e7   : > { %v959_v10 = vpop.f32.mrf.mxu0 }
 0x2e8   : > { %1107 = vst.msk [vmem:[%s1609_s26 + $0x20] sm:$0xff] %vm260_vm1, %v959_v10  ;;  %v1328_v11 = vpop.f32.mrf.mxu1 }
 0x2e9   : > { %v1333_v12 = vpop.f32.mrf.mxu0 }
 0x2ea   : > { %v1005_v13 = vpop.f32.mrf.mxu1 }
 0x2eb   : > { %v962_v14 = vpop.f32.mrf.mxu0  ;;  %1108 = vst.msk [vmem:[%s1609_s26 + $0x28] sm:$0xff] %vm260_vm1, %v1005_v13 }
 0x2ec   : > { %v1339_v15 = vpop.f32.mrf.mxu1 }
 0x2ed   : > { %v1334_v16 = vpop.f32.mrf.mxu0 }
 0x2ee   : > { %v1008_v17 = vpop.f32.mrf.mxu1 }
 0x2ef   : > { %v1051_v18 = vpop.f32.mrf.mxu0 }
 0x2f0   : > { %1109 = vst.msk [vmem:[%s1609_s26 + $0x30] sm:$0xff] %vm260_vm1, %v1051_v18  ;;  %v1340_v19 = vpop.f32.mrf.mxu1 }
 0x2f1   : > { %v1345_v20 = vpop.f32.mrf.mxu0 }
 0x2f2   : > { %v1097_v21 = vpop.f32.mrf.mxu1 }
 0x2f3   : > { %v1054_v22 = vpop.f32.mrf.mxu0  ;;  %1110 = vst.msk [vmem:[%s1609_s26 + $0x38] sm:$0xff] %vm260_vm1, %v1097_v21 }
 0x2f4   : > { %v1351_v23 = vpop.f32.mrf.mxu1 }
 0x2f5   : > { %v1346_v24 = vpop.f32.mrf.mxu0 }
 0x2f6   : > { %v1100_v25 = vpop.f32.mrf.mxu1 }
 0x2f8   : > { %v1352_v26 = vpop.f32.mrf.mxu1 }
 0x2f9 PF: > { %s13_s12 = sadd.s32 1, %s1401_s12  }
 0x2fa   : > { %p10_p4 = scmp.ge.s32.totalorder %s13_s12, 4  }
 0x2fc   :  { %12 = sbr.rel (!%p10_p4) target bundleno = 1 (0x1), region = 68 }

// kernel: decoder_forward.25
= control target key start
LH: loop header
LB: loop body
LE: loop exit
PB: predicated region body
PF: predicated region fallthrough
CT: control target
= control target key end

     0   :  { %vm19_vm0 = vcmask 523264   ;;  %v132_v0 = vmov 0.0   ;;  %vm133_vm1 = vmmov 0   ;;  %vm43_vm2 = vcmask 261120   ;;  %s181_s1 = inlined_call_operand.vmem [shape: bf16[32,64], index: 1, kind: input, shape index: {}]   ;;  %s182_s0 = inlined_call_operand.vmem [shape: f32[16,32], index: 0, kind: input, shape index: {}]   ;;  %s183_s2 = inlined_call_operand.vmem [shape: f32[1,64], index: 2, kind: input, shape index: {}]   ;;  %s184_s3 = inlined_call_operand.vmem [shape: f32[16,64], index: 3, kind: output, shape index: {}]  }
   0x1   :  { %120 = vmatprep.subr.bf16.mxu0 %v132_v0  ;;  %v130_v1 = vld [vmem:[%s181_s1 + $0x8] sm:$0xff]   ;;  %124 = vmatprep.mubr.msk.bf16.mxu0 %vm133_vm1, %v132_v0  ;;  %20 = vst.msk [vmem:[#allocation2] sm:$0xff] %vm19_vm0, %v132_v0  ;;  %21 = vst.msk [vmem:[#allocation2 + $0x8] sm:$0xff] %vm19_vm0, %v132_v0  ;;  %v131_v2 = vld [vmem:[%s181_s1] sm:$0xff]  }
   0x2   :  { %121 = vmatpush3.bf16.msra.mxu0 %v130_v1  ;;  %v24_v3 = vld [vmem:[%s182_s0] sm:$0xff]  ;;  %v25_v4 = vld [vmem:[%s182_s0 + $0x8] sm:$0xff] }
   0x3   :  { %122 = vmatprep.subr.bf16.mxu0 %v132_v0  ;;  %v26_v5 = vpack.c.bf16 %v25_v4, %v24_v3  ;;  %v116_v14 = vld [vmem:[%s183_s2] ss:$0 sm:$0xff] }
   0x6   :  { %123 = vmatpush3.bf16.msra.mxu0 %v131_v2 }
   0x8   :  { %v22_v6 = vld [vmem:[#allocation2] sm:$0xff]  ;;  %v23_v10 = vld [vmem:[#allocation2 + $0x8] sm:$0xff] }
   0x9   :  { %125 = vmatmul.mubr.msk.bf16.vlgmr.msra.gmra.mxu0 %vm43_vm2, %v26_v5 }
  0xc9   :  { %v81_v7 = vpop.f32.mrf.mxu0 }
  0xca   :  { %v88_v8 = vadd.f32 %v81_v7, %v22_v6 }
  0xcb   :  { %v126_v9 = vpop.f32.mrf.mxu0 }
  0xcc   :  { %91 = vst.msk [vmem:[#allocation2] sm:$0xff] %vm19_vm0, %v88_v8 }
  0xcd   :  { %v84_v11 = vpop.f32.mrf.mxu0 }
  0xce   :  { %v89_v12 = vadd.f32 %v84_v11, %v23_v10 }
  0xcf   :  { %v127_v13 = vpop.f32.mrf.mxu0 }
  0xd0   :  { %92 = vst.msk [vmem:[#allocation2 + $0x8] sm:$0xff] %vm19_vm0, %v89_v12 }
  0xd3   :  { %v96_v15 = vld [vmem:[#allocation2] sm:$0xff] }
  0xd4   :  { %v105_v16 = vadd.f32 %v116_v14, %v96_v15 }
  0xd6   :  { %107 = vst.msk [vmem:[%s184_s3] sm:$0xff] %vm19_vm0, %v105_v16 }
  0xd7   :  { %v97_v17 = vld [vmem:[#allocation2 + $0x8] sm:$0xff] }
  0xd8   :  { %v106_v18 = vadd.f32 %v116_v14, %v97_v17 }
  0xda   :  { %108 = vst.msk [vmem:[%s184_s3 + $0x8] sm:$0xff] %vm19_vm0, %v106_v18 }

// kernel: decoder_forward.28
= control target key start
LH: loop header
LB: loop body
LE: loop exit
PB: predicated region body
PF: predicated region fallthrough
CT: control target
= control target key end

     0   :  { %s804_s12 = smov 0   ;;  %s806_s13 = smov 0   ;;  %s908_s0 = inlined_call_operand.vmem [shape: f32[16,32], index: 0, kind: input, shape index: {}]   ;;  %s909_s1 = inlined_call_operand.vmem [shape: bf16[32,2048], index: 1, kind: input, shape index: {}]   ;;  %s910_s2 = inlined_call_operand.vmem [shape: f32[1,2048], index: 2, kind: input, shape index: {}]   ;;  %s911_s3 = inlined_call_operand.vmem [shape: f32[16,2048], index: 3, kind: output, shape index: {}]  }
   0x1   :  { %s808_s14 = smov 0   ;;  %s810_s15 = smov 0  }
   0x2   :  { %s812_s16 = smov 0  }
   0x3 LB: > { %s28_s17 = sadd.s32 1, %s777_s15  ;;  %s661_s18 = sadd.s32 4294967295, %s781_s16   ;;  %s781_s16 = sphi %s812_s16, %s13_s16   ;;  %s777_s15 = sphi %s810_s15, %s916_s15   ;;  %s773_s14 = sphi %s808_s14, %s915_s14   ;;  %s769_s13 = sphi %s806_s13, %s914_s13   ;;  %s765_s12 = sphi %s804_s12, %s913_s12  }
   0x4   : > { %p30_p0 = scmp.ge.s32.totalorder %s28_s17, 4  ;;  %p76_p1 = scmp.ne.s32.totalorder %s769_s13, %s765_s12 }
   0x5   : > { %p77_p2 = scmp.eq.s32.totalorder %s781_s16, 0  ;;  %p134_p4 = scmp.eq.s32.totalorder %s661_s18, 3 }
   0x6   : > { %s918_s17 = smov (%p30_p0, %s28_s17), 0  ;;  %s69_s20 = sadd.s32 1, %s769_s13 }
   0x7   : > { %p78_p3 = por %p77_p2, %p76_p1  ;;  %s65_s19 = ssub.s32 %s777_s15, %s918_s17 }
   0x8   : > { %p67_p5 = scmp.eq.s32.totalorder %s65_s19, 0  ;;  %p839_p6 = por %p134_p4, %p76_p1 }
   0x9   : > { %p665_p7 = scmp.ge.s32.totalorder %s781_s16, 4 }
   0xa   : > { %s844_s22 = scalar_select %p67_p5, %s769_s13, %s69_s20  }
   0xb   : > { %168 = sbr.rel (%p665_p7) target bundleno = 24 (0x18), region = 20 }
  0x10   : > { %171 = sbr.rel (!%p78_p3) target bundleno = 24 (0x18), region = 24  ;;  %s173_s23 = sand.u32 (%p78_p3), 1, %s769_s13  }
  0x11   : > { %s688_s24 = sshll.u32 (%p78_p3), %s777_s15, 4  ;;  %s666_s25 = sshll.u32 (%p78_p3), %s173_s23, 6 }
  0x12   : > { %s181_s28 = scalar_lea.vmem (%p78_p3), %s909_s1, %s688_s24  ;;  %s175_s29 = scalar_lea.vmem (%p78_p3), [#allocation3], %s666_s25 }
  0x13   : > { %v194_v0 = vld [vmem:[%s181_s28] sm:$0xff] (%p78_p3)  ;;  %v196_v1 = vld [vmem:[%s181_s28 + $0x8] sm:$0xff] (%p78_p3) }
  0x14   : > { %v198_v2 = vld [vmem:[%s181_s28 + $0x40] sm:$0xff] (%p78_p3)  ;;  %195 = vst [vmem:[%s175_s29] sm:$0xff] (%p78_p3), %v194_v0  ;;  %197 = vst [vmem:[%s175_s29 + $0x8] sm:$0xff] (%p78_p3), %v196_v1  ;;  %v200_v3 = vld [vmem:[%s181_s28 + $0x48] sm:$0xff] (%p78_p3) }
  0x15   : > { %199 = vst [vmem:[%s175_s29 + $0x10] sm:$0xff] %v198_v2  ;;  %v202_v4 = vld [vmem:[%s181_s28 + $0x80] sm:$0xff]  ;;  %v204_v5 = vld [vmem:[%s181_s28 + $0x88] sm:$0xff]  ;;  %201 = vst [vmem:[%s175_s29 + $0x18] sm:$0xff] %v200_v3 }
  0x16   : > { %203 = vst [vmem:[%s175_s29 + $0x20] sm:$0xff] %v202_v4  ;;  %205 = vst [vmem:[%s175_s29 + $0x28] sm:$0xff] %v204_v5  ;;  %v206_v6 = vld [vmem:[%s181_s28 + $0xc0] sm:$0xff]  ;;  %v208_v7 = vld [vmem:[%s181_s28 + $0xc8] sm:$0xff] }
  0x17   : > { %207 = vst [vmem:[%s175_s29 + $0x30] sm:$0xff] %v206_v6  ;;  %209 = vst [vmem:[%s175_s29 + $0x38] sm:$0xff] %v208_v7 }
  0x18 PF: > { %p669_p8 = scmp.ge.s32.totalorder %s781_s16, 1  ;;  %p222_p9 = scmp.lt.s32.totalorder %s781_s16, 5 }
  0x1a   : > { %p223_p10 = pnand %p669_p8, %p222_p9 }
  0x1b   : > { %s229_s30 = sand.u32 (!%p223_p10), 1, %s765_s12   ;;  %s672_s10 = sshll.u32 (!%p223_p10), %s773_s14, 2 }
  0x1c   : > { %226 = sbr.rel (%p223_p10) target bundleno = 255 (0xff), region = 51  ;;  %s855_s4 = sshll.u32 (!%p223_p10), %s229_s30, 6 }
  0x1d   : > { %s231_s5 = scalar_lea.vmem (!%p223_p10), [#allocation3], %s855_s4  ;;  %p275_p11 = scmp.lt.s32.totalorder (!%p223_p10), %s672_s10, 15 }
  0x1e   : > { %s869_s19 = scalar_lea.vmem (!%p223_p10), [#allocation4], %s855_s4 }
  0x21   : > { %v783_v8 = vmov 0   ;;  %v731_v9 = vld [vmem:[%s231_s5 + $0x24] ss:$16 sps:$4 sm:$0xff]   ;;  %v733_v10 = vld [vmem:[%s231_s5 + $0x2c] ss:$16 sps:$4 sm:$0xff]   ;;  %vm353_vm0 = vcmask 261120   ;;  %v472_v20 = vlaneseq }
  0x22   : > { %389 = vmatprep.mubr.bf16.mxu0 %v783_v8  ;;  %432 = vmatprep.mubr.bf16.mxu1 %v783_v8  ;;  %v735_v11 = vld [vmem:[%s231_s5 + $0x20] ss:$16 sps:$4 sm:$0xff]   ;;  %v736_v12 = vld [vmem:[%s231_s5 + $0x28] ss:$16 sps:$4 sm:$0xff]   ;;  %v737_v15 = vld [vmem:[%s231_s5 + $0x4] ss:$16 sps:$4 sm:$0xff]  }
  0x23   : > { %369 = vmatprep.subr.bf16.mxu0 %v731_v9  ;;  %v302_v13 = vld [vmem:[%s908_s0] sm:$0xff]  ;;  %v303_v14 = vld [vmem:[%s908_s0 + $0x8] sm:$0xff]  ;;  %412 = vmatprep.subr.bf16.mxu1 %v733_v10  ;;  %s920_s10 = smov (!%p275_p11, %s672_s10), 15  ;;  %v473_v21 = vshrl.u32 %v472_v20, 7  ;;  %s689_s20 = sshll.u32 (%p839_p6), %s773_s14, 5 }
  0x24   : > { %370 = vmatpush1.bf16.msra.mxu0 %v735_v11  ;;  %413 = vmatpush1.bf16.msra.mxu1 %v736_v12  ;;  %v739_v16 = vld [vmem:[%s231_s5 + $0xc] ss:$16 sps:$4 sm:$0xff]   ;;  %v741_v17 = vld [vmem:[%s231_s5] ss:$16 sps:$4 sm:$0xff]   ;;  %v742_v18 = vld [vmem:[%s231_s5 + $0x8] ss:$16 sps:$4 sm:$0xff]   ;;  %v304_v19 = vpack.c.bf16 %v303_v14, %v302_v13  ;;  %s277_s18 = scalar_lea.vmem %s910_s2, %s920_s10  ;;  %s528_s25 = scalar_lea.vmem (%p839_p6), %s911_s3, %s689_s20 }
  0x25   : > { %371 = vmatprep.subr.bf16.mxu0 %v737_v15  ;;  %414 = vmatprep.subr.bf16.mxu1 %v739_v16  ;;  %v474_v22 = vsub.s32 0, %v473_v21  ;;  %v482_v23 = vsub.s32 2, %v473_v21  ;;  %v470_v24 = vld [vmem:[%s277_s18] sm:$0xf]  ;;  %v478_v25 = vsub.s32 1, %v473_v21  ;;  %v486_v26 = vsub.s32 3, %v473_v21 }
  0x27   : > { %v475_v27 = vrot.slane %v470_v24, %v474_v22  ;;  %v483_v28 = vrot.slane %v470_v24, %v482_v23  ;;  %v479_v29 = vrot.slane %v470_v24, %v478_v25  ;;  %v487_v30 = vrot.slane %v470_v24, %v486_v26 }
  0x28   : > { %372 = vmatpush1.bf16.msra.mxu0 %v741_v17  ;;  %415 = vmatpush1.bf16.msra.mxu1 %v742_v18 }
  0x2b   : > { %681 = vmatmul.mubr.msk.bf16.vlgmr.msra.gmra.mxu0 %vm353_vm0, %v304_v19  ;;  %682 = vmatmul.mubr.msk.bf16.vlgmr.msra.gmra.mxu1 %vm353_vm0, %v304_v19 }
  0xeb   : > { %v391_v31 = vpop.f32.mrf.mxu0  ;;  %v434_v32 = vpop.f32.mrf.mxu1 }
  0xec   : > { %v492_v33 = vadd.f32 %v475_v27, %v391_v31  ;;  %v494_v34 = vadd.f32 %v483_v28, %v434_v32 }
  0xed   : > { %v393_v35 = vpop.f32.mrf.mxu0  ;;  %v436_v36 = vpop.f32.mrf.mxu1 }
  0xee   : > { %v500_v37 = vmax.f32 %v492_v33, 0.0  ;;  %v502_v38 = vmax.f32 %v494_v34, 0.0  ;;  %v493_v39 = vadd.f32 %v479_v29, %v393_v35  ;;  %v495_v40 = vadd.f32 %v487_v30, %v436_v36 }
  0xef   : > { %v395_v41 = vpop.f32.mrf.mxu0  ;;  %v438_v42 = vpop.f32.mrf.mxu1 }
  0xf0   : > { %508 = vst [vmem:[%s869_s19] sm:$0xff] %v500_v37  ;;  %510 = vst [vmem:[%s869_s19 + $0x10] sm:$0xff] %v502_v38  ;;  %v501_v43 = vmax.f32 %v493_v39, 0.0  ;;  %v503_v44 = vmax.f32 %v495_v40, 0.0  ;;  %v496_v45 = vadd.f32 %v475_v27, %v395_v41  ;;  %v498_v46 = vadd.f32 %v483_v28, %v438_v42 }
  0xf1   : > { %v397_v47 = vpop.f32.mrf.mxu0  ;;  %v440_v48 = vpop.f32.mrf.mxu1 }
  0xf2   : > { %509 = vst [vmem:[%s869_s19 + $0x8] sm:$0xff] %v501_v43  ;;  %511 = vst [vmem:[%s869_s19 + $0x18] sm:$0xff] %v503_v44  ;;  %v504_v49 = vmax.f32 %v496_v45, 0.0  ;;  %v506_v50 = vmax.f32 %v498_v46, 0.0  ;;  %v497_v51 = vadd.f32 %v479_v29, %v397_v47  ;;  %v499_v52 = vadd.f32 %v487_v30, %v440_v48  ;;  %522 = sbr.rel (!%p839_p6) target bundleno = 255 (0xff), region = 67 }
  0xf4   : > { %512 = vst [vmem:[%s869_s19 + $0x20] sm:$0xff] %v504_v49  ;;  %514 = vst [vmem:[%s869_s19 + $0x30] sm:$0xff] %v506_v50  ;;  %v505_v53 = vmax.f32 %v497_v51, 0.0  ;;  %v507_v54 = vmax.f32 %v499_v52, 0.0 }
  0xf6   : > { %513 = vst [vmem:[%s869_s19 + $0x28] sm:$0xff] %v505_v53  ;;  %515 = vst [vmem:[%s869_s19 + $0x38] sm:$0xff] %v507_v54 }
  0xf7   : > { %v541_v55 = vld [vmem:[%s869_s19] sm:$0xff]  ;;  %v545_v57 = vld [vmem:[%s869_s19 + $0x10] sm:$0xff] }
  0xf8   : > { %542 = vst [vmem:[%s528_s25] sm:$0xff] %v541_v55  ;;  %546 = vst [vmem:[%s528_s25 + $0x10] sm:$0xff] %v545_v57 }
  0xf9   : > { %v543_v56 = vld [vmem:[%s869_s19 + $0x8] sm:$0xff]  ;;  %v547_v58 = vld [vmem:[%s869_s19 + $0x18] sm:$0xff] }
  0xfa   : > { %544 = vst [vmem:[%s528_s25 + $0x8] sm:$0xff] %v543_v56  ;;  %548 = vst [vmem:[%s528_s25 + $0x18] sm:$0xff] %v547_v58 }
  0xfb   : > { %v549_v59 = vld [vmem:[%s869_s19 + $0x20] sm:$0xff]  ;;  %v553_v61 = vld [vmem:[%s869_s19 + $0x30] sm:$0xff] }
  0xfc   : > { %550 = vst [vmem:[%s528_s25 + $0x80] sm:$0xff] %v549_v59  ;;  %554 = vst [vmem:[%s528_s25 + $0x90] sm:$0xff] %v553_v61 }
  0xfd   : > { %v551_v60 = vld [vmem:[%s869_s19 + $0x28] sm:$0xff]  ;;  %v555_v62 = vld [vmem:[%s869_s19 + $0x38] sm:$0xff] }
  0xfe   : > { %552 = vst [vmem:[%s528_s25 + $0x88] sm:$0xff] %v551_v60  ;;  %556 = vst [vmem:[%s528_s25 + $0x98] sm:$0xff] %v555_v62 }
  0xff PF: > { %s13_s16 = sadd.s32 1, %s781_s16   ;;  %s913_s12 = smov %s769_s13 }
 0x100   : > { %p10_p12 = scmp.ge.s32.totalorder %s13_s16, 6   ;;  %s914_s13 = smov %s844_s22 }
 0x101   : > { %s915_s14 = smov %s777_s15  ;;  %s916_s15 = smov %s918_s17 }
 0x102   :  { %12 = sbr.rel (!%p10_p12) target bundleno = 3 (0x3), region = 127 }

// kernel: decoder_forward.20
= control target key start
LH: loop header
LB: loop body
LE: loop exit
PB: predicated region body
PF: predicated region fallthrough
CT: control target
= control target key end

     0   :  { %vm19_vm0 = vcmask 261120   ;;  %v171_v0 = vmov 0.0   ;;  %vm172_vm1 = vmmov 0   ;;  %vm67_vm2 = vcmask 654336   ;;  %s229_s1 = inlined_call_operand.vmem [shape: bf16[80,32], index: 1, kind: input, shape index: {}]   ;;  %s230_s0 = inlined_call_operand.vmem [shape: f32[16,80], index: 0, kind: input, shape index: {}]   ;;  %s231_s2 = inlined_call_operand.vmem [shape: f32[1,32], index: 2, kind: input, shape index: {}]   ;;  %s232_s3 = inlined_call_operand.vmem [shape: f32[16,32], index: 3, kind: output, shape index: {}]  }
   0x1   :  { %150 = vmatprep.subr.bf16.mxu0 %v171_v0  ;;  %v166_v1 = vld [vmem:[%s229_s1 + $0x20] sm:$0xff]   ;;  %160 = vmatprep.mubr.msk.bf16.mxu0 %vm172_vm1, %v171_v0  ;;  %20 = vst.msk [vmem:[#allocation2] sm:$0xff] %vm19_vm0, %v171_v0  ;;  %21 = vst.msk [vmem:[#allocation2 + $0x8] sm:$0xff] %vm19_vm0, %v171_v0  ;;  %v167_v2 = vld [vmem:[%s229_s1 + $0x18] sm:$0xff]  }
   0x2   :  { %151 = vmatpush3.bf16.msra.mxu0 %v166_v1  ;;  %v168_v3 = vld [vmem:[%s229_s1 + $0x10] sm:$0xff]   ;;  %v169_v4 = vld [vmem:[%s229_s1 + $0x8] sm:$0xff]   ;;  %v170_v5 = vld [vmem:[%s229_s1] sm:$0xff]  }
   0x3   :  { %152 = vmatprep.subr.bf16.mxu0 %v171_v0  ;;  %v24_v6 = vld [vmem:[%s230_s0] sm:$0xff]  ;;  %v25_v7 = vld [vmem:[%s230_s0 + $0x8] sm:$0xff] }
   0x4   :  { %v26_v8 = vpack.c.bf16 %v25_v7, %v24_v6  ;;  %v143_v17 = vld [vmem:[%s231_s2] ss:$0 sm:$0xff] }
   0x6   :  { %153 = vmatpush3.bf16.msra.mxu0 %v167_v2 }
   0x7   :  { %154 = vmatprep.subr.bf16.mxu0 %v171_v0 }
   0x8   :  { %v22_v9 = vld [vmem:[#allocation2] sm:$0xff]  ;;  %v23_v13 = vld [vmem:[#allocation2 + $0x8] sm:$0xff] }
   0xa   :  { %155 = vmatpush3.bf16.msra.mxu0 %v168_v3 }
   0xb   :  { %156 = vmatprep.subr.bf16.mxu0 %v171_v0 }
   0xe   :  { %157 = vmatpush3.bf16.msra.mxu0 %v169_v4 }
   0xf   :  { %158 = vmatprep.subr.bf16.mxu0 %v171_v0 }
  0x12   :  { %159 = vmatpush3.bf16.msra.mxu0 %v170_v5 }
  0x15   :  { %161 = vmatmul.mubr.msk.bf16.vlgmr.msra.gmra.mxu0 %vm67_vm2, %v26_v8 }
  0xd5   :  { %v105_v10 = vpop.f32.mrf.mxu0 }
  0xd6   :  { %v112_v11 = vadd.f32 %v105_v10, %v22_v9 }
  0xd7   :  { %v162_v12 = vpop.f32.mrf.mxu0 }
  0xd8   :  { %115 = vst.msk [vmem:[#allocation2] sm:$0xff] %vm19_vm0, %v112_v11 }
  0xd9   :  { %v108_v14 = vpop.f32.mrf.mxu0 }
  0xda   :  { %v113_v15 = vadd.f32 %v108_v14, %v23_v13 }
  0xdb   :  { %v163_v16 = vpop.f32.mrf.mxu0 }
  0xdc   :  { %116 = vst.msk [vmem:[#allocation2 + $0x8] sm:$0xff] %vm19_vm0, %v113_v15 }
  0xdf   :  { %v120_v18 = vld [vmem:[#allocation2] sm:$0xff] }
  0xe0   :  { %v129_v19 = vadd.f32 %v143_v17, %v120_v18 }
  0xe2   :  { %131 = vst.msk [vmem:[%s232_s3] sm:$0xff] %vm19_vm0, %v129_v19 }
  0xe3   :  { %v121_v20 = vld [vmem:[#allocation2 + $0x8] sm:$0xff] }
  0xe4   :  { %v130_v21 = vadd.f32 %v143_v17, %v121_v20 }
  0xe6   :  { %132 = vst.msk [vmem:[%s232_s3 + $0x8] sm:$0xff] %vm19_vm0, %v130_v21 }

// kernel: decoder_forward.29
= control target key start
LH: loop header
LB: loop body
LE: loop exit
PB: predicated region body
PF: predicated region fallthrough
CT: control target
= control target key end

     0   :  { %s1136_s21 = smov 0   ;;  %s1138_s22 = smov 0   ;;  %s1276_s0 = inlined_call_operand.vmem [shape: f32[16,2048], index: 0, kind: input, shape index: {}]   ;;  %s1277_s1 = inlined_call_operand.vmem [shape: bf16[2048,32], index: 1, kind: input, shape index: {}]   ;;  %s1278_s2 = inlined_call_operand.vmem [shape: f32[1,32], index: 2, kind: input, shape index: {}]   ;;  %s1279_s3 = inlined_call_operand.vmem [shape: f32[16,32], index: 3, kind: input, shape index: {}]   ;;  %s1280_s4 = inlined_call_operand.vmem [shape: f32[1,32], index: 4, kind: input, shape index: {}]   ;;  %s1281_s5 = inlined_call_operand.vmem [shape: f32[1,32], index: 5, kind: input, shape index: {}]   ;;  %s1282_s6 = inlined_call_operand.vmem [shape: f32[16,32], index: 6, kind: output, shape index: {}]  }
   0x1   :  { %s1140_s23 = smov 0   ;;  %s1142_s24 = smov 0  }
   0x2   :  { %s1144_s25 = smov 0  }
   0x3 LB: > { %s28_s26 = sadd.s32 1, %s1094_s24  ;;  %p51_p1 = scmp.ne.s32.totalorder %s1086_s22, %s1082_s21  ;;  %s1098_s25 = sphi %s1144_s25, %s16_s25   ;;  %s1094_s24 = sphi %s1142_s24, %s1286_s24   ;;  %s1090_s23 = sphi %s1140_s23, %s1285_s23   ;;  %s1086_s22 = sphi %s1138_s22, %s1284_s22   ;;  %s1082_s21 = sphi %s1136_s21, %s1283_s21  }
   0x4   : > { %p29_p0 = scmp.ge.s32.totalorder %s28_s26, 4  ;;  %p52_p2 = scmp.eq.s32.totalorder %s1098_s25, 0 }
   0x5   : > { %s44_s28 = sadd.s32 1, %s1086_s22  ;;  %p889_p5 = scmp.ge.s32.totalorder %s1098_s25, 4 }
   0x6   : > { %s1288_s26 = smov (%p29_p0, %s28_s26), 0  ;;  %p53_p3 = por %p52_p2, %p51_p1 }
   0x7   : > { %s40_s27 = ssub.s32 %s1094_s24, %s1288_s26  ;;  %236 = sbr.rel (%p889_p5) target bundleno = 20 (0x14), region = 32 }
   0x8   : > { %p42_p4 = scmp.eq.s32.totalorder %s40_s27, 0 }
   0xa   : > { %s1171_s29 = scalar_select %p42_p4, %s1086_s22, %s44_s28  }
   0xc   : > { %239 = sbr.rel (!%p53_p3) target bundleno = 20 (0x14), region = 36  ;;  %s241_s30 = sand.u32 (%p53_p3), 1, %s1086_s22  }
   0xd   : > { %s938_s7 = sshll.u32 (%p53_p3), %s1094_s24, 5  ;;  %s890_s8 = sshll.u32 (%p53_p3), %s241_s30, 6 }
   0xe   : > { %s249_s11 = scalar_lea.vmem (%p53_p3), %s1276_s0, %s938_s7  ;;  %s243_s12 = scalar_lea.vmem (%p53_p3), [#allocation3], %s890_s8 }
   0xf   : > { %v262_v0 = vld [vmem:[%s249_s11] sm:$0xff] (%p53_p3)  ;;  %v264_v1 = vld [vmem:[%s249_s11 + $0x8] sm:$0xff] (%p53_p3)  ;;  %v266_v2 = vld [vmem:[%s249_s11 + $0x10] sm:$0xff] (%p53_p3) }
  0x10   : > { %263 = vst [vmem:[%s243_s12] sm:$0xff] (%p53_p3), %v262_v0  ;;  %265 = vst [vmem:[%s243_s12 + $0x8] sm:$0xff] (%p53_p3), %v264_v1  ;;  %v268_v3 = vld [vmem:[%s249_s11 + $0x18] sm:$0xff] (%p53_p3)  ;;  %v270_v4 = vld [vmem:[%s249_s11 + $0x80] sm:$0xff] (%p53_p3) }
  0x11   : > { %267 = vst [vmem:[%s243_s12 + $0x10] sm:$0xff] %v266_v2  ;;  %v272_v5 = vld [vmem:[%s249_s11 + $0x88] sm:$0xff]  ;;  %269 = vst [vmem:[%s243_s12 + $0x18] sm:$0xff] %v268_v3  ;;  %v274_v6 = vld [vmem:[%s249_s11 + $0x90] sm:$0xff] }
  0x12   : > { %271 = vst [vmem:[%s243_s12 + $0x20] sm:$0xff] %v270_v4  ;;  %273 = vst [vmem:[%s243_s12 + $0x28] sm:$0xff] %v272_v5  ;;  %v276_v7 = vld [vmem:[%s249_s11 + $0x98] sm:$0xff] }
  0x13   : > { %275 = vst [vmem:[%s243_s12 + $0x30] sm:$0xff] %v274_v6  ;;  %277 = vst [vmem:[%s243_s12 + $0x38] sm:$0xff] %v276_v7 }
  0x14 PF: > { %p893_p6 = scmp.ge.s32.totalorder %s1098_s25, 1  ;;  %p291_p7 = scmp.lt.s32.totalorder %s1098_s25, 5 }
  0x16   : > { %p292_p8 = pnand %p893_p6, %p291_p7 }
  0x17   : > { %s298_s13 = sand.u32 (!%p292_p8), 1, %s1082_s21   ;;  %s895_s14 = sshll.u32 (!%p292_p8), %s1090_s23, 6 }
  0x18   : > { %295 = sbr.rel (%p292_p8) target bundleno = 597 (0x255), region = 63  ;;  %s894_s15 = sshll.u32 (!%p292_p8), %s298_s13, 6 }
  0x19   : > { %p340_p9 = scmp.lt.s32.totalorder (!%p292_p8), %s895_s14, 255  ;;  %s1188_s20 = scalar_lea.vmem (!%p292_p8), [#allocation3], %s894_s15 }
  0x1a   : > { %p897_p10 = scmp.ne.s32.totalorder (!%p292_p8), %s1090_s23, 0 }
  0x1d   : > { %s1290_s14 = smov (!%p340_p9, %s895_s14), 255  ;;  %361 = sbr.rel (%p897_p10) target bundleno = 36 (0x24), region = 71 }
  0x1e   : > { %s896_s16 = sshll.u32 %s1290_s14, 2 }
  0x1f   : > { %s1186_s19 = scalar_lea.vmem %s1277_s1, %s896_s16 }
  0x22   : > { %vm362_vm0 = vcmask 261120   ;;  %v1100_v8 = vmov 0.0  }
  0x23   : > { %363 = vst.msk [vmem:[#allocation2] sm:$0xff] %vm362_vm0, %v1100_v8  ;;  %364 = vst.msk [vmem:[#allocation2 + $0x8] sm:$0xff] %vm362_vm0, %v1100_v8 }
  0x24 PF: > { %v1024_v9 = vld [vmem:[%s1186_s19 + $0x78] sm:$0xff]   ;;  %v1028_v13 = vld [vmem:[%s1186_s19 + $0x70] sm:$0xff]   ;;  %v1032_v17 = vld [vmem:[%s1186_s19 + $0x68] sm:$0xff]   ;;  %vm719_vm1 = vcmask 261120   ;;  %p930_p11 = scmp.ne.s32.totalorder %s1090_s23, 3 }
  0x25   : > { %v1025_v10 = vld [vmem:[%s1186_s19 + $0xf8] sm:$0xff]   ;;  %939 = vmatprep.subr.bf16.mxu0 %v1024_v9  ;;  %v1029_v14 = vld [vmem:[%s1186_s19 + $0xf0] sm:$0xff]   ;;  %v1033_v18 = vld [vmem:[%s1186_s19 + $0xe8] sm:$0xff]  }
  0x26   : > { %v1026_v11 = vld [vmem:[%s1186_s19 + $0x38] sm:$0xff]   ;;  %961 = vmatprep.subr.bf16.mxu1 %v1025_v10  ;;  %v1030_v15 = vld [vmem:[%s1186_s19 + $0x30] sm:$0xff]   ;;  %v1034_v19 = vld [vmem:[%s1186_s19 + $0x28] sm:$0xff]  }
  0x27   : > { %v1027_v12 = vld [vmem:[%s1186_s19 + $0xb8] sm:$0xff]   ;;  %940 = vmatpush3.bf16.msra.mxu0 %v1026_v11  ;;  %v1031_v16 = vld [vmem:[%s1186_s19 + $0xb0] sm:$0xff]   ;;  %v1035_v20 = vld [vmem:[%s1186_s19 + $0xa8] sm:$0xff]  }
  0x28   : > { %962 = vmatpush3.bf16.msra.mxu1 %v1027_v12  ;;  %941 = vmatprep.subr.bf16.mxu0 %v1028_v13  ;;  %v1036_v21 = vld [vmem:[%s1186_s19 + $0x60] sm:$0xff]   ;;  %v1040_v25 = vld [vmem:[%s1186_s19 + $0x58] sm:$0xff]   ;;  %v1044_v29 = vld [vmem:[%s1186_s19 + $0x50] sm:$0xff]  }
  0x29   : > { %963 = vmatprep.subr.bf16.mxu1 %v1029_v14  ;;  %v1037_v22 = vld [vmem:[%s1186_s19 + $0xe0] sm:$0xff]   ;;  %v1041_v26 = vld [vmem:[%s1186_s19 + $0xd8] sm:$0xff]   ;;  %v1045_v30 = vld [vmem:[%s1186_s19 + $0xd0] sm:$0xff]  }
  0x2a   : > { %v1038_v23 = vld [vmem:[%s1186_s19 + $0x20] sm:$0xff]   ;;  %v1042_v27 = vld [vmem:[%s1186_s19 + $0x18] sm:$0xff]   ;;  %v1046_v31 = vld [vmem:[%s1186_s19 + $0x10] sm:$0xff]  }
  0x2b   : > { %942 = vmatpush3.bf16.msra.mxu0 %v1030_v15  ;;  %v1039_v24 = vld [vmem:[%s1186_s19 + $0xa0] sm:$0xff]   ;;  %v1043_v28 = vld [vmem:[%s1186_s19 + $0x98] sm:$0xff]   ;;  %v1047_v32 = vld [vmem:[%s1186_s19 + $0x90] sm:$0xff]  }
  0x2c   : > { %964 = vmatpush3.bf16.msra.mxu1 %v1031_v16  ;;  %943 = vmatprep.subr.bf16.mxu0 %v1032_v17  ;;  %v1048_v33 = vld [vmem:[%s1186_s19 + $0x48] sm:$0xff]   ;;  %v1052_v37 = vld [vmem:[%s1186_s19 + $0x40] sm:$0xff]   ;;  %v368_v41 = vld [vmem:[%s1188_s20 + $0x8] sm:$0xff] }
  0x2d   : > { %965 = vmatprep.subr.bf16.mxu1 %v1033_v18  ;;  %v1049_v34 = vld [vmem:[%s1186_s19 + $0xc8] sm:$0xff]   ;;  %v1053_v38 = vld [vmem:[%s1186_s19 + $0xc0] sm:$0xff]   ;;  %v372_v42 = vld [vmem:[%s1188_s20 + $0x28] sm:$0xff] }
  0x2e   : > { %v1050_v35 = vld [vmem:[%s1186_s19 + $0x8] sm:$0xff]   ;;  %v1054_v39 = vld [vmem:[%s1186_s19] sm:$0xff]   ;;  %v376_v44 = vpack.c.bf16 %v372_v42, %v368_v41  ;;  %v367_v46 = vld [vmem:[%s1188_s20] sm:$0xff] }
  0x2f   : > { %944 = vmatpush3.bf16.msra.mxu0 %v1034_v19  ;;  %v1051_v36 = vld [vmem:[%s1186_s19 + $0x88] sm:$0xff]   ;;  %v1055_v40 = vld [vmem:[%s1186_s19 + $0x80] sm:$0xff]   ;;  %v371_v47 = vld [vmem:[%s1188_s20 + $0x20] sm:$0xff] }
  0x30   : > { %966 = vmatpush3.bf16.msra.mxu1 %v1035_v20  ;;  %945 = vmatprep.subr.bf16.mxu0 %v1036_v21  ;;  %v370_v43 = vld [vmem:[%s1188_s20 + $0x18] sm:$0xff]  ;;  %v375_v49 = vpack.c.bf16 %v371_v47, %v367_v46  ;;  %v369_v50 = vld [vmem:[%s1188_s20 + $0x10] sm:$0xff] }
  0x31   : > { %967 = vmatprep.subr.bf16.mxu1 %v1037_v22  ;;  %v374_v45 = vld [vmem:[%s1188_s20 + $0x38] sm:$0xff]  ;;  %v373_v51 = vld [vmem:[%s1188_s20 + $0x30] sm:$0xff]  ;;  %667 = vmatprep.mubr.bf16.mxu0 %v376_v44 }
  0x32   : > { %v378_v48 = vpack.c.bf16 %v374_v45, %v370_v43  ;;  %v377_v52 = vpack.c.bf16 %v373_v51, %v369_v50  ;;  %v365_v60 = vld [vmem:[#allocation2] sm:$0xff]  ;;  %v366_v4 = vld [vmem:[#allocation2 + $0x8] sm:$0xff] }
  0x33   : > { %946 = vmatpush3.bf16.msra.mxu0 %v1038_v23 }
  0x34   : > { %968 = vmatpush3.bf16.msra.mxu1 %v1039_v24  ;;  %947 = vmatprep.subr.bf16.mxu0 %v1040_v25 }
  0x35   : > { %969 = vmatprep.subr.bf16.mxu1 %v1041_v26  ;;  %708 = vmatprep.mubr.bf16.mxu1 %v378_v48 }
  0x37   : > { %948 = vmatpush3.bf16.msra.mxu0 %v1042_v27 }
  0x38   : > { %970 = vmatpush3.bf16.msra.mxu1 %v1043_v28  ;;  %949 = vmatprep.subr.bf16.mxu0 %v1044_v29 }
  0x39   : > { %971 = vmatprep.subr.bf16.mxu1 %v1045_v30 }
  0x3b   : > { %950 = vmatpush3.bf16.msra.mxu0 %v1046_v31 }
  0x3c   : > { %972 = vmatpush3.bf16.msra.mxu1 %v1047_v32  ;;  %951 = vmatprep.subr.bf16.mxu0 %v1048_v33 }
  0x3d   : > { %973 = vmatprep.subr.bf16.mxu1 %v1049_v34 }
  0x3f   : > { %952 = vmatpush3.bf16.msra.mxu0 %v1050_v35 }
  0x40   : > { %974 = vmatpush3.bf16.msra.mxu1 %v1051_v36  ;;  %953 = vmatprep.subr.bf16.mxu0 %v1052_v37 }
  0x41   : > { %975 = vmatprep.subr.bf16.mxu1 %v1053_v38 }
  0x43   : > { %954 = vmatpush3.bf16.msra.mxu0 %v1054_v39 }
  0x44   : > { %976 = vmatpush3.bf16.msra.mxu1 %v1055_v40 }
  0x46   : > { %668 = vmatmul.mubr.bf16.vlgmr.msra.gmra.mxu0 %v375_v49 }
  0x47   : > { %709 = vmatmul.mubr.bf16.vlgmr.msra.gmra.mxu1 %v377_v52 }
 0x106   : > { %v955_v53 = vpop.f32.mrf.mxu0 }
 0x107   : > { %v977_v54 = vpop.f32.mrf.mxu1 }
 0x108   : > { %v956_v55 = vpop.f32.mrf.mxu0 }
 0x109   : > { %v957_v56 = vadd.f32 %v956_v55, %v955_v53  ;;  %v978_v57 = vpop.f32.mrf.mxu1 }
 0x10a   : > { %v979_v58 = vadd.f32 %v978_v57, %v977_v54  ;;  %v958_v59 = vpop.f32.mrf.mxu0 }
 0x10b   : > { %v980_v61 = vpop.f32.mrf.mxu1 }
 0x10c   : > { %v711_v62 = vadd.f32 %v979_v58, %v957_v56  ;;  %v959_v63 = vpop.f32.mrf.mxu0 }
 0x10d   : > { %v960_v0 = vadd.f32 %v959_v63, %v958_v59  ;;  %v981_v1 = vpop.f32.mrf.mxu1 }
 0x10e   : > { %v717_v2 = vadd.f32 %v711_v62, %v365_v60  ;;  %v982_v3 = vadd.f32 %v981_v1, %v980_v61 }
 0x110   : > { %720 = vst.msk [vmem:[#allocation2] sm:$0xff] %vm719_vm1, %v717_v2  ;;  %v714_v5 = vadd.f32 %v982_v3, %v960_v0  ;;  %725 = sbr.rel (%p930_p11) target bundleno = 597 (0x255), region = 75 }
 0x112   : > { %v718_v6 = vadd.f32 %v714_v5, %v366_v4 }
 0x114   : > { %721 = vst.msk [vmem:[#allocation2 + $0x8] sm:$0xff] %vm719_vm1, %v718_v6 }
 0x115   : > { %v931_v8 = vld [vmem:[%s1278_s2] ss:$0 sm:$0xff]  ;;  %v738_v12 = vld [vmem:[%s1279_s3 + $0x8] sm:$0xff] }
 0x116   : > { %v737_v9 = vld [vmem:[%s1279_s3] sm:$0xff] }
 0x117   : > { %v726_v7 = vld [vmem:[#allocation2] sm:$0xff] }
 0x118   : > { %v735_v10 = vadd.f32 %v931_v8, %v726_v7  ;;  %v932_v35 = vld [vmem:[%s1280_s4] ss:$0 sm:$0xff] }
 0x119   : > { %v933_v37 = vld [vmem:[%s1281_s5] ss:$0 sm:$0xff] }
 0x11a   : > { %v739_v14 = vadd.f32 %v737_v9, %v735_v10 }
 0x11b   : > { %v727_v11 = vld [vmem:[#allocation2 + $0x8] sm:$0xff] }
 0x11c   : > { %v736_v13 = vadd.f32 %v931_v8, %v727_v11  ;;  %v741_v16 = vsel %vm719_vm1, %v739_v14, 0.0 }
 0x11d   : > { %742 = vadd.xlane.f32.xlu0 %v741_v16 }
 0x11e   : > { %v740_v15 = vadd.f32 %v738_v12, %v736_v13 }
 0x120   : > { %v744_v17 = vsel %vm719_vm1, %v740_v15, 0.0 }
 0x121   : > { %745 = vadd.xlane.f32.xlu0 %v744_v17 }
 0x1a6   : > { %v743_v18 = vpop.xlane.xlu0 %742 }
 0x1a7   : > { %v748_v19 = vmul.f32 0.03125, %v743_v18 }
 0x1a9   : > { %v750_v20 = vsub.f32 %v739_v14, %v748_v19 }
 0x1aa   : > { %v746_v21 = vpop.xlane.xlu0 %745 }
 0x1ab   : > { %v749_v22 = vmul.f32 0.03125, %v746_v21  ;;  %v752_v23 = vmul.f32 %v750_v20, %v750_v20 }
 0x1ad   : > { %v751_v24 = vsub.f32 %v740_v15, %v749_v22  ;;  %v754_v25 = vsel %vm719_vm1, %v752_v23, 0.0 }
 0x1ae   : > { %755 = vadd.xlane.f32.xlu1 %v754_v25 }
 0x1af   : > { %v753_v26 = vmul.f32 %v751_v24, %v751_v24 }
 0x1b1   : > { %v757_v27 = vsel %vm719_vm1, %v753_v26, 0.0 }
 0x1b2   : > { %758 = vadd.xlane.f32.xlu1 %v757_v27 }
 0x237   : > { %v756_v28 = vpop.xlane.xlu1 %755 }
 0x238   : > { %v760_v29 = vmul.f32 0.03125, %v756_v28 }
 0x23a   : > { %v762_v30 = vadd.f32 1e-05, %v760_v29 }
 0x23b   : > { %v759_v31 = vpop.xlane.xlu1 %758 }
 0x23c   : > { %1056 = vrsqrt.f32 %v762_v30  ;;  %v761_v32 = vmul.f32 0.03125, %v759_v31 }
 0x23e   : > { %v763_v33 = vadd.f32 1e-05, %v761_v32 }
 0x240   : > { %1058 = vrsqrt.f32 %v763_v33 }
 0x249   : > { %v1057_v34 = vpop.eup %1056 }
 0x24a   : > { %v766_v36 = vmul.f32 %v1057_v34, %v750_v20 }
 0x24c   : > { %v775_v38 = vmul.f32 %v932_v35, %v766_v36 }
 0x24d   : > { %v1059_v39 = vpop.eup %1058 }
 0x24e   : > { %v784_v40 = vadd.f32 %v933_v37, %v775_v38  ;;  %v767_v41 = vmul.f32 %v1059_v39, %v751_v24 }
 0x250   : > { %786 = vst.msk [vmem:[%s1282_s6] sm:$0xff] %vm719_vm1, %v784_v40  ;;  %v776_v42 = vmul.f32 %v932_v35, %v767_v41 }
 0x252   : > { %v785_v43 = vadd.f32 %v933_v37, %v776_v42 }
 0x254   : > { %787 = vst.msk [vmem:[%s1282_s6 + $0x8] sm:$0xff] %vm719_vm1, %v785_v43 }
 0x255 PF: > { %s16_s25 = sadd.s32 1, %s1098_s25   ;;  %s1283_s21 = smov %s1086_s22 }
 0x256   : > { %p13_p12 = scmp.ge.s32.totalorder %s16_s25, 6   ;;  %s1284_s22 = smov %s1171_s29 }
 0x257   : > { %s1285_s23 = smov %s1094_s24  ;;  %s1286_s24 = smov %s1288_s26 }
 0x258   :  { %15 = sbr.rel (!%p13_p12) target bundleno = 3 (0x3), region = 116 }

// kernel: decoder_forward.39
= control target key start
LH: loop header
LB: loop body
LE: loop exit
PB: predicated region body
PF: predicated region fallthrough
CT: control target
= control target key end

     0   :  { %v168_v1 = vmov 0.0   ;;  %vm169_vm0 = vmmov 0   ;;  %s211_s0 = inlined_call_operand.vmem [shape: f32[16,32], index: 0, kind: input, shape index: {}]   ;;  %s212_s1 = inlined_call_operand.vmem [shape: bf16[32,128], index: 1, kind: input, shape index: {}]   ;;  %s213_s2 = inlined_call_operand.vmem [shape: f32[1,128], index: 2, kind: input, shape index: {}]   ;;  %s214_s3 = inlined_call_operand.hbm [shape: f32[16,128], index: 3, kind: output, shape index: {}]  }
   0x1   :  { %v144_v0 = vld [vmem:[%s212_s1 + $0x8] sm:$0xff]   ;;  %131 = vmatprep.subr.bf16.mxu0 %v168_v1  ;;  %v145_v2 = vld [vmem:[%s212_s1] sm:$0xff]   ;;  %135 = vmatprep.mubr.msk.bf16.mxu0 %vm169_vm0, %v168_v1 }
   0x2   :  { %132 = vmatpush3.bf16.msra.mxu0 %v144_v0  ;;  %v24_v3 = vld [vmem:[%s211_s0] sm:$0xff]  ;;  %v25_v4 = vld [vmem:[%s211_s0 + $0x8] sm:$0xff] }
   0x3   :  { %8 = vsyncpa [#allocation4], 0  ;;  %133 = vmatprep.subr.bf16.mxu0 %v168_v1  ;;  %v26_v5 = vpack.c.bf16 %v25_v4, %v24_v3  ;;  %vm43_vm1 = vcmask 261120   ;;  %v127_v6 = vld [vmem:[%s213_s2] ss:$0 sm:$0xff]  ;;  %s170_s1 = smov [#allocation3]  }
   0x4   :  { %s113_s22 = sshll.u32 %s170_s1, 4  ;;  %s114_s22 = int_to_ptr.vmem [resolvable:$true] %s113_s22 }
   0x5   :  { %s146_s0 = scalar_lea.vmem %s114_s22, 256  ;;  %p151_p1 = scmp.lt.s32.totalorder %s114_s22, %s114_s22 }
   0x6   :  { %134 = vmatpush3.bf16.msra.mxu0 %v145_v2  ;;  %p147_p0 = scmp.ne.s32.totalorder %s114_s22, %s146_s0  ;;  %p152_p2 = scmp.lt.s32.totalorder %s146_s0, %s146_s0 }
   0x8   :  { %p153_p3 = por %p152_p2, %p151_p1 }
   0x9   :  { %136 = vmatmul.mubr.msk.bf16.vlgmr.msra.gmra.mxu0 %vm43_vm1, %v26_v5 }
   0xa   :  { %p154_p4 = pnand %p153_p3, %p147_p0 }
  0xc9   :  { %v81_v7 = vpop.f32.mrf.mxu0 }
  0xca   :  { %v104_v8 = vadd.f32 %v127_v6, %v81_v7 }
  0xcb   :  { %v137_v9 = vpop.f32.mrf.mxu0 }
  0xcc   :  { %106 = vst [vmem:[#allocation3] sm:$0xff] %v104_v8 }
  0xcd   :  { %v84_v10 = vpop.f32.mrf.mxu0 }
  0xce   :  { %v105_v11 = vadd.f32 %v127_v6, %v84_v10 }
  0xcf   :  { %v138_v12 = vpop.f32.mrf.mxu0 }
  0xd0   :  { %107 = vst [vmem:[#allocation3 + $0x8] sm:$0xff] %v105_v11 }
  0xd1   :  { %157 = shalt.err (!%p154_p4)
}
  0xd2   :  { %s171_s23 = smov 128   ;;  %s172_s2 = smov 8  }
  0xd3   :  { %119 = dma.vmem_to_hbm [thread:$0]  %s114_s22, 256, %s214_s3, [#allocation4], %s171_s23, %s171_s23, %s172_s2  }
  0xd4   :  { %166 = dma.done.wait [#allocation4], 256  }
  0xd5   :  { %167 = vsyncadd [#allocation4], 4294967040 }
  0xd6   :  { %123 = vsyncpa [#allocation4], 1 }

</bundles_post_ra>
